<compile_context>
chip_gen: v5e
topology: v5e:2x2
jax: 0.10.0
libtpu: 0.0.40
codegen_flags: <defaults>
</compile_context>

<pallas_src>
import functools

import jax
import jax.numpy as jnp
from jax import lax
from jax.experimental import pallas as pl
from jax.experimental.pallas import tpu as pltpu


# ---------------------------------------------------------------------------
# Kernel: one grid step processes one batch element (H*W rows, all channels).
# ---------------------------------------------------------------------------
def _bottleneck_kernel(x_ref, w1_ref, b1_ref, w2_ref, b2_ref, w3_ref, b3_ref,
                       out_ref, *, W):
    """
    x_ref   : (H*W, Cin)         f32        input slab for this batch element
    w1_ref  : (Cin, Cmid)        mxu_dtype  1x1 conv weights  (BN1 scale folded in)
    w2_ref  : (9, Cmid, Cmid)    mxu_dtype  3x3 conv weights  (BN2 scale folded in)
    w3_ref  : (Cmid, Cout)       mxu_dtype  1x1 conv weights  (BN3 scale folded in)
    b*_ref  : (1, C)             f32        folded BatchNorm biases
    out_ref : (H*W, Cout)        f32
    """
    HW, _ = x_ref.shape
    Cmid = w1_ref.shape[1]
    mxu_dtype = w1_ref.dtype

    # ---- conv1 (1x1) + BN1 bias + ReLU : one MXU dot, K = Cin -----------------
    y1 = jnp.dot(x_ref[...].astype(mxu_dtype), w1_ref[...],
                 preferred_element_type=jnp.float32)
    h1 = jnp.maximum(y1 + b1_ref[...], 0.0)            # f32 (HW, Cmid)

    # ---- conv2 (3x3, stride 1, pad 1) + BN2 bias + ReLU -----------------------
    # 9 accumulated MXU dots on shifted copies of h1; no pad buffer / im2col
    # scratch is ever materialized.  A flat row-major shift by
    # off = (dy-1)*W + (dx-1) with zero fill handles the vertical padding; the
    # horizontal padding is handled by pre-zeroing the source column that a
    # given dx never legitimately reads (col W-1 for dx=0, col 0 for dx=2).
    w_idx = lax.broadcasted_iota(jnp.int32, (HW, 1), 0) % W
    zero = jnp.zeros_like(h1)
    h1_dx = (jnp.where(w_idx < W - 1, h1, zero),        # dx = 0 (reads col w-1)
             h1,                                        # dx = 1 (reads col w  )
             jnp.where(w_idx > 0, h1, zero))            # dx = 2 (reads col w+1)

    def shifted(v, off):
        # tap[r] = v[r + off] if 0 <= r + off < HW else 0
        if off == 0:
            return v
        pad = jnp.zeros((abs(off), v.shape[1]), v.dtype)
        if off > 0:
            return jnp.concatenate([v[off:, :], pad], axis=0)
        return jnp.concatenate([pad, v[:HW + off, :]], axis=0)

    y2 = jnp.zeros((HW, Cmid), jnp.float32)
    for dy in range(3):
        for dx in range(3):
            t = dy * 3 + dx
            off = (dy - 1) * W + (dx - 1)
            tap = shifted(h1_dx[dx], off).astype(mxu_dtype)
            y2 = y2 + jnp.dot(tap, w2_ref[t],
                              preferred_element_type=jnp.float32)
    h2 = jnp.maximum(y2 + b2_ref[...], 0.0)

    # ---- conv3 (1x1) + BN3 bias : one MXU dot, K = Cmid -----------------------
    y3 = jnp.dot(h2.astype(mxu_dtype), w3_ref[...],
                 preferred_element_type=jnp.float32)
    y3 = y3 + b3_ref[...]

    # ---- identity residual + final ReLU ---------------------------------------
    # Re-read x_ref here (cheap vld from resident VMEM) instead of keeping the
    # conv1-time load live across the whole block.
    out_ref[...] = jnp.maximum(y3 + x_ref[...], 0.0).astype(out_ref.dtype)


# ---------------------------------------------------------------------------
# Wrappers
# ---------------------------------------------------------------------------
def bottleneck_nhwc(x_nhwc, params, mxu_dtype=jnp.bfloat16):
    """x_nhwc: (N, H, W, Cin) f32 -> (N, H, W, Cout) f32, Cout == Cin.

    mxu_dtype: dtype of the matmul operands (weights + activation casts).
               bf16 is the default (MXU-native on v5e/v6e/v7x); accumulation is
               always f32 via preferred_element_type.  Pass jnp.float32 for a
               bit-accurate (slow) path.
    """
    N, H, W, Cin = x_nhwc.shape
    Cmid = params["w1"].shape[1]
    Cout = params["w3"].shape[1]
    assert params["w1"].shape[0] == Cin
    assert Cin == Cout, "identity residual requires inplanes == planes * 4"
    HW = H * W

    # Free (contiguous) reshape: activations as (N, H*W, C).  The per-step block
    # covers the full (HW, C) trailing dims, so the (8,128) block-divisibility
    # rule is satisfied for any H, W (incl. 14x14 / 7x7 stages).
    x3d = x_nhwc.reshape(N, HW, Cin).astype(jnp.float32)

    # Fold BN scales into the conv weights in f32, THEN cast to the MXU dtype.
    w1 = (params["w1"] * params["s1"][None, :]).astype(mxu_dtype)        # (Cin, Cmid)
    w2 = (params["w2"] * params["s2"][None, None, None, :]) \
        .reshape(9, Cmid, Cmid).astype(mxu_dtype)                        # HWIO -> (9, Cmid, Cmid)
    w3 = (params["w3"] * params["s3"][None, :]).astype(mxu_dtype)        # (Cmid, Cout)
    b1 = params["b1"].reshape(1, Cmid).astype(jnp.float32)
    b2 = params["b2"].reshape(1, Cmid).astype(jnp.float32)
    b3 = params["b3"].reshape(1, Cout).astype(jnp.float32)

    # Advisory cost estimate for XLA scheduling around the custom call.
    w_itemsize = jnp.dtype(mxu_dtype).itemsize
    mm_macs = Cin * Cmid + 9 * Cmid * Cmid + Cmid * Cout
    flops = 2 * N * HW * mm_macs + 4 * N * HW * (2 * Cmid + Cout)
    bytes_accessed = (4 * N * HW * (Cin + Cout)
                      + w_itemsize * mm_macs
                      + 4 * (2 * Cmid + Cout))

    kernel = functools.partial(_bottleneck_kernel, W=W)

    grid_spec = pltpu.PrefetchScalarGridSpec(
        num_scalar_prefetch=0,
        grid=(N,),
        in_specs=[
            pl.BlockSpec((None, HW, Cin), lambda n: (n, 0, 0)),      # x slab per batch
            pl.BlockSpec((Cin, Cmid), lambda n: (0, 0)),             # w1 (VMEM-resident)
            pl.BlockSpec((1, Cmid), lambda n: (0, 0)),               # b1
            pl.BlockSpec((9, Cmid, Cmid), lambda n: (0, 0, 0)),      # w2 (VMEM-resident)
            pl.BlockSpec((1, Cmid), lambda n: (0, 0)),               # b2
            pl.BlockSpec((Cmid, Cout), lambda n: (0, 0)),            # w3 (VMEM-resident)
            pl.BlockSpec((1, Cout), lambda n: (0, 0)),               # b3
        ],
        out_specs=pl.BlockSpec((None, HW, Cout), lambda n: (n, 0, 0)),
    )

    out3d = pl.pallas_call(
        kernel,
        out_shape=jax.ShapeDtypeStruct((N, HW, Cout), jnp.float32),
        grid_spec=grid_spec,
        compiler_params=pltpu.CompilerParams(
            dimension_semantics=("parallel",),     # batch axis: megacore-shardable
            vmem_limit_bytes=32 * 1024 * 1024,     # safe within v7x's 64 MiB physical
        ),
        cost_estimate=pl.CostEstimate(
            flops=flops, transcendentals=0, bytes_accessed=bytes_accessed),
    )(x3d, w1, b1, w2, b2, w3, b3)

    return out3d.reshape(N, H, W, Cout)


def bottleneck_nchw(x_nchw, params, mxu_dtype=jnp.bfloat16):
    """PyTorch-layout convenience wrapper: (N, C, H, W) -> (N, C, H, W).

    A full NHWC network should call bottleneck_nhwc directly and skip these
    transposes (two extra HBM passes around an HBM-bound block).
    """
    x_nhwc = jnp.transpose(x_nchw, (0, 2, 3, 1))
    out = bottleneck_nhwc(x_nhwc, params, mxu_dtype=mxu_dtype)
    return jnp.transpose(out, (0, 3, 1, 2))


# ---------------------------------------------------------------------------
# Deterministic parameter construction (synthetic; mirrors the module's shapes)
# ---------------------------------------------------------------------------
def make_params(key, inplanes, planes, eps=1e-5):
    expansion = 4
    assert inplanes == planes * expansion, \
        "identity residual (downsample=None) requires inplanes == planes * 4"
    cout = planes * expansion
    ks = jax.random.split(key, 6)

    def bn_fold(k, c):
        kg, kb, km, kv = jax.random.split(k, 4)
        gamma = 1.0 + 0.1 * jax.random.normal(kg, (c,), jnp.float32)
        beta = 0.1 * jax.random.normal(kb, (c,), jnp.float32)
        running_mean = 0.1 * jax.random.normal(km, (c,), jnp.float32)
        running_var = 1.0 + 0.1 * jax.random.uniform(kv, (c,), jnp.float32)
        scale = gamma / jnp.sqrt(running_var + eps)
        bias = beta - running_mean * scale
        return scale, bias

    def uconv(k, shape, fan_in):
        bound = (6.0 / fan_in) ** 0.5
        return jax.random.uniform(k, shape, jnp.float32, -bound, bound)

    s1, b1 = bn_fold(ks[0], planes)
    s2, b2 = bn_fold(ks[1], planes)
    s3, b3 = bn_fold(ks[2], cout)
    w1 = uconv(ks[3], (inplanes, planes), inplanes)          # 1x1: (Cin, Cmid)
    w2 = uconv(ks[4], (3, 3, planes, planes), 9 * planes)    # 3x3: HWIO
    w3 = uconv(ks[5], (planes, cout), planes)                # 1x1: (Cmid, Cout)
    return dict(w1=w1, s1=s1, b1=b1, w2=w2, s2=s2, b2=b2, w3=w3, s3=s3, b3=b3)


# ---------------------------------------------------------------------------
# Pure-JAX reference (lax.conv) for the correctness check
# ---------------------------------------------------------------------------
def reference_bottleneck(x_nchw, p):
    x = jnp.transpose(x_nchw, (0, 2, 3, 1)).astype(jnp.float32)
    dn = ("NHWC", "HWIO", "NHWC")

    def conv(a, w_hwio):
        return lax.conv_general_dilated(a, w_hwio, (1, 1), "SAME",
                                        dimension_numbers=dn)

    Cin, Cmid = p["w1"].shape
    Cout = p["w3"].shape[1]
    y = conv(x, p["w1"].reshape(1, 1, Cin, Cmid))
    y = jnp.maximum(y * p["s1"] + p["b1"], 0.0)
    y = conv(y, p["w2"])
    y = jnp.maximum(y * p["s2"] + p["b2"], 0.0)
    y = conv(y, p["w3"].reshape(1, 1, Cmid, Cout))
    y = y * p["s3"] + p["b3"]
    out = jnp.maximum(y + x, 0.0)
    return jnp.transpose(out, (0, 3, 1, 2))


if __name__ == "__main__":
    key = jax.random.PRNGKey(0)
    k_x, k_p = jax.random.split(key)

    planes = 4
    inplanes = planes * 4          # 16; identity residual: inplanes == planes * expansion
    N, H, W = 2, 16, 16

    x = jax.random.normal(k_x, (N, inplanes, H, W), jnp.float32)
    params = make_params(k_p, inplanes, planes)

    ref = jax.block_until_ready(reference_bottleneck(x, params))

    # Default bf16-MXU path (recommended on v5e/v6e/v7x): f32 accumulation,
    # loose mixed-precision sanity bound against the f32 reference.
    out_bf16 = jax.block_until_ready(jax.jit(bottleneck_nchw)(x, params))
    assert out_bf16.shape == (N, inplanes, H, W)
    assert jnp.allclose(out_bf16, ref, atol=1e-1, rtol=1e-1), \
        "bf16 kernel outside mixed-precision bound"

    # f32-MXU path: tight correctness check against the lax.conv reference.
    run_f32 = jax.jit(functools.partial(bottleneck_nchw, mxu_dtype=jnp.float32))
    out_f32 = jax.block_until_ready(run_f32(x, params))
    assert out_f32.shape == (N, inplanes, H, W)
    assert jnp.allclose(out_f32, ref, atol=1e-3, rtol=1e-3), \
        "f32 kernel mismatch vs reference"

    print("KERNEL_OK")
</pallas_src>

<mosaic_0001>
module attributes {stable_mosaic.version = 11 : i64} {
  func.func @_bottleneck_kernel(%arg0: i32, %arg1: memref<1x256x16xf32, #tpu.memory_space<vmem>>, %arg2: memref<16x4xbf16, #tpu.memory_space<vmem>>, %arg3: memref<1x4xf32, #tpu.memory_space<vmem>>, %arg4: memref<9x4x4xbf16, #tpu.memory_space<vmem>>, %arg5: memref<1x4xf32, #tpu.memory_space<vmem>>, %arg6: memref<4x16xbf16, #tpu.memory_space<vmem>>, %arg7: memref<1x16xf32, #tpu.memory_space<vmem>>, %arg8: memref<1x256x16xf32, #tpu.memory_space<vmem>>) attributes {dimension_semantics = [#tpu.dimension_semantics<parallel>], iteration_bounds = array<i64: 2>, scalar_prefetch = 0 : i64, scratch_operands = 0 : i64, tpu.core_type = #tpu.core_type<tc>, window_params = [{transform_indices = @transform_0, window_bounds = array<i64: 1, 256, 16>}, {pipeline_mode = #tpu.pipeline_mode<synchronous>, transform_indices = @transform_1, window_bounds = array<i64: 16, 4>}, {pipeline_mode = #tpu.pipeline_mode<synchronous>, transform_indices = @transform_2, window_bounds = array<i64: 1, 4>}, {pipeline_mode = #tpu.pipeline_mode<synchronous>, transform_indices = @transform_3, window_bounds = array<i64: 9, 4, 4>}, {pipeline_mode = #tpu.pipeline_mode<synchronous>, transform_indices = @transform_4, window_bounds = array<i64: 1, 4>}, {pipeline_mode = #tpu.pipeline_mode<synchronous>, transform_indices = @transform_5, window_bounds = array<i64: 4, 16>}, {pipeline_mode = #tpu.pipeline_mode<synchronous>, transform_indices = @transform_6, window_bounds = array<i64: 1, 16>}, {transform_indices = @transform_7, window_bounds = array<i64: 1, 256, 16>}]} {
    %c0 = arith.constant 0 : index
    %c0_0 = arith.constant 0 : index
    %c0_1 = arith.constant 0 : index
    %0 = vector.load %arg1[%c0, %c0_0, %c0_1] : memref<1x256x16xf32, #tpu.memory_space<vmem>>, vector<1x256x16xf32>
    %1 = vector.shape_cast %0 : vector<1x256x16xf32> to vector<256x16xf32>
    %2 = arith.truncf %1 : vector<256x16xf32> to vector<256x16xbf16>
    %c0_2 = arith.constant 0 : index
    %c0_3 = arith.constant 0 : index
    %3 = vector.load %arg2[%c0_2, %c0_3] : memref<16x4xbf16, #tpu.memory_space<vmem>>, vector<16x4xbf16>
    %cst = arith.constant dense<0.000000e+00> : vector<256x4xf32>
    %4 = tpu.matmul %2, %3, %cst {dimension_numbers = #tpu.dot_dimension_numbers<[1], [0], [0], [1], [0, 0, 1, 1], [], []>} : vector<256x16xbf16>, vector<16x4xbf16>, vector<256x4xf32> -> vector<256x4xf32>
    %c0_4 = arith.constant 0 : index
    %c0_5 = arith.constant 0 : index
    %5 = vector.load %arg3[%c0_4, %c0_5] : memref<1x4xf32, #tpu.memory_space<vmem>>, vector<1x4xf32>
    %6 = vector.broadcast %5 : vector<1x4xf32> to vector<256x4xf32>
    %7 = arith.addf %4, %6 : vector<256x4xf32>
    %cst_6 = arith.constant 0.000000e+00 : f32
    %8 = vector.broadcast %cst_6 : f32 to vector<256x4xf32>
    %9 = arith.maximumf %7, %8 : vector<256x4xf32>
    %10 = tpu.iota {dimensions = array<i32: 0>} : vector<256x1xi32>
    %c16_i32 = arith.constant 16 : i32
    %c0_i32 = arith.constant 0 : i32
    %11 = arith.cmpi eq, %c16_i32, %c0_i32 : i32
    %c1_i32 = arith.constant 1 : i32
    %12 = arith.select %11, %c1_i32, %c16_i32 : i32
    %13 = vector.broadcast %12 : i32 to vector<256x1xi32>
    %14 = arith.remsi %10, %13 : vector<256x1xi32>
    %c0_i32_7 = arith.constant 0 : i32
    %15 = vector.broadcast %c0_i32_7 : i32 to vector<256x1xi32>
    %16 = arith.cmpi ne, %14, %15 : vector<256x1xi32>
    %c0_i32_8 = arith.constant 0 : i32
    %17 = vector.broadcast %c0_i32_8 : i32 to vector<256x1xi32>
    %18 = arith.cmpi slt, %14, %17 : vector<256x1xi32>
    %c0_i32_9 = arith.constant 0 : i32
    %19 = arith.cmpi slt, %12, %c0_i32_9 : i32
    %20 = vector.broadcast %19 : i1 to vector<256x1xi1>
    %21 = vector.broadcast %20 : vector<256x1xi1> to vector<256x1xi1>
    %22 = arith.xori %18, %21 : vector<256x1xi1>
    %23 = arith.andi %22, %16 : vector<256x1xi1>
    %24 = vector.broadcast %12 : i32 to vector<256x1xi32>
    %25 = arith.addi %14, %24 : vector<256x1xi32>
    %26 = arith.select %23, %25, %14 : vector<256x1xi1>, vector<256x1xi32>
    %cst_10 = arith.constant 0.000000e+00 : f32
    %27 = vector.broadcast %cst_10 : f32 to vector<256x4xf32>
    %c15_i32 = arith.constant 15 : i32
    %28 = vector.broadcast %c15_i32 : i32 to vector<256x1xi32>
    %29 = arith.cmpi slt, %26, %28 : vector<256x1xi32>
    %30 = vector.shape_cast %29 : vector<256x1xi1> to vector<256x1xi1>
    %31 = vector.broadcast %30 : vector<256x1xi1> to vector<256x4xi1>
    %32 = arith.select %31, %9, %27 : vector<256x4xi1>, vector<256x4xf32>
    %c0_i32_11 = arith.constant 0 : i32
    %33 = vector.broadcast %c0_i32_11 : i32 to vector<256x1xi32>
    %34 = arith.cmpi sgt, %26, %33 : vector<256x1xi32>
    %35 = vector.shape_cast %34 : vector<256x1xi1> to vector<256x1xi1>
    %36 = vector.broadcast %35 : vector<256x1xi1> to vector<256x4xi1>
    %37 = arith.select %36, %9, %27 : vector<256x4xi1>, vector<256x4xf32>
    %cst_12 = arith.constant 0.000000e+00 : f32
    %38 = vector.broadcast %cst_12 : f32 to vector<256x4xf32>
    %cst_13 = arith.constant 0.000000e+00 : f32
    %39 = vector.broadcast %cst_13 : f32 to vector<17x4xf32>
    %40 = vector.extract_strided_slice %32 {offsets = [0, 0], sizes = [239, 4], strides = [1, 1]} : vector<256x4xf32> to vector<239x4xf32>
    %41 = tpu.concatenate %39, %40 in 0 : vector<17x4xf32>, vector<239x4xf32> -> vector<256x4xf32>
    %42 = arith.truncf %41 : vector<256x4xf32> to vector<256x4xbf16>
    %c0_14 = arith.constant 0 : index
    %c0_15 = arith.constant 0 : index
    %c0_16 = arith.constant 0 : index
    %43 = vector.load %arg4[%c0_14, %c0_15, %c0_16] : memref<9x4x4xbf16, #tpu.memory_space<vmem>>, vector<1x4x4xbf16>
    %44 = vector.shape_cast %43 : vector<1x4x4xbf16> to vector<4x4xbf16>
    %cst_17 = arith.constant dense<0.000000e+00> : vector<256x4xf32>
    %45 = tpu.matmul %42, %44, %cst_17 {dimension_numbers = #tpu.dot_dimension_numbers<[1], [0], [0], [1], [0, 0, 1, 1], [], []>} : vector<256x4xbf16>, vector<4x4xbf16>, vector<256x4xf32> -> vector<256x4xf32>
    %46 = arith.addf %38, %45 : vector<256x4xf32>
    %cst_18 = arith.constant 0.000000e+00 : f32
    %47 = vector.broadcast %cst_18 : f32 to vector<16x4xf32>
    %48 = vector.extract_strided_slice %9 {offsets = [0, 0], sizes = [240, 4], strides = [1, 1]} : vector<256x4xf32> to vector<240x4xf32>
    %49 = tpu.concatenate %47, %48 in 0 : vector<16x4xf32>, vector<240x4xf32> -> vector<256x4xf32>
    %50 = arith.truncf %49 : vector<256x4xf32> to vector<256x4xbf16>
    %c1 = arith.constant 1 : index
    %c0_19 = arith.constant 0 : index
    %c0_20 = arith.constant 0 : index
    %51 = vector.load %arg4[%c1, %c0_19, %c0_20] : memref<9x4x4xbf16, #tpu.memory_space<vmem>>, vector<1x4x4xbf16>
    %52 = vector.shape_cast %51 : vector<1x4x4xbf16> to vector<4x4xbf16>
    %cst_21 = arith.constant dense<0.000000e+00> : vector<256x4xf32>
    %53 = tpu.matmul %50, %52, %cst_21 {dimension_numbers = #tpu.dot_dimension_numbers<[1], [0], [0], [1], [0, 0, 1, 1], [], []>} : vector<256x4xbf16>, vector<4x4xbf16>, vector<256x4xf32> -> vector<256x4xf32>
    %54 = arith.addf %46, %53 : vector<256x4xf32>
    %cst_22 = arith.constant 0.000000e+00 : f32
    %55 = vector.broadcast %cst_22 : f32 to vector<15x4xf32>
    %56 = vector.extract_strided_slice %37 {offsets = [0, 0], sizes = [241, 4], strides = [1, 1]} : vector<256x4xf32> to vector<241x4xf32>
    %57 = tpu.concatenate %55, %56 in 0 : vector<15x4xf32>, vector<241x4xf32> -> vector<256x4xf32>
    %58 = arith.truncf %57 : vector<256x4xf32> to vector<256x4xbf16>
    %c2 = arith.constant 2 : index
    %c0_23 = arith.constant 0 : index
    %c0_24 = arith.constant 0 : index
    %59 = vector.load %arg4[%c2, %c0_23, %c0_24] : memref<9x4x4xbf16, #tpu.memory_space<vmem>>, vector<1x4x4xbf16>
    %60 = vector.shape_cast %59 : vector<1x4x4xbf16> to vector<4x4xbf16>
    %cst_25 = arith.constant dense<0.000000e+00> : vector<256x4xf32>
    %61 = tpu.matmul %58, %60, %cst_25 {dimension_numbers = #tpu.dot_dimension_numbers<[1], [0], [0], [1], [0, 0, 1, 1], [], []>} : vector<256x4xbf16>, vector<4x4xbf16>, vector<256x4xf32> -> vector<256x4xf32>
    %62 = arith.addf %54, %61 : vector<256x4xf32>
    %cst_26 = arith.constant 0.000000e+00 : f32
    %63 = vector.broadcast %cst_26 : f32 to vector<1x4xf32>
    %64 = vector.extract_strided_slice %32 {offsets = [0, 0], sizes = [255, 4], strides = [1, 1]} : vector<256x4xf32> to vector<255x4xf32>
    %65 = tpu.concatenate %63, %64 in 0 : vector<1x4xf32>, vector<255x4xf32> -> vector<256x4xf32>
    %66 = arith.truncf %65 : vector<256x4xf32> to vector<256x4xbf16>
    %c3 = arith.constant 3 : index
    %c0_27 = arith.constant 0 : index
    %c0_28 = arith.constant 0 : index
    %67 = vector.load %arg4[%c3, %c0_27, %c0_28] : memref<9x4x4xbf16, #tpu.memory_space<vmem>>, vector<1x4x4xbf16>
    %68 = vector.shape_cast %67 : vector<1x4x4xbf16> to vector<4x4xbf16>
    %cst_29 = arith.constant dense<0.000000e+00> : vector<256x4xf32>
    %69 = tpu.matmul %66, %68, %cst_29 {dimension_numbers = #tpu.dot_dimension_numbers<[1], [0], [0], [1], [0, 0, 1, 1], [], []>} : vector<256x4xbf16>, vector<4x4xbf16>, vector<256x4xf32> -> vector<256x4xf32>
    %70 = arith.addf %62, %69 : vector<256x4xf32>
    %71 = arith.truncf %9 : vector<256x4xf32> to vector<256x4xbf16>
    %c4 = arith.constant 4 : index
    %c0_30 = arith.constant 0 : index
    %c0_31 = arith.constant 0 : index
    %72 = vector.load %arg4[%c4, %c0_30, %c0_31] : memref<9x4x4xbf16, #tpu.memory_space<vmem>>, vector<1x4x4xbf16>
    %73 = vector.shape_cast %72 : vector<1x4x4xbf16> to vector<4x4xbf16>
    %cst_32 = arith.constant dense<0.000000e+00> : vector<256x4xf32>
    %74 = tpu.matmul %71, %73, %cst_32 {dimension_numbers = #tpu.dot_dimension_numbers<[1], [0], [0], [1], [0, 0, 1, 1], [], []>} : vector<256x4xbf16>, vector<4x4xbf16>, vector<256x4xf32> -> vector<256x4xf32>
    %75 = arith.addf %70, %74 : vector<256x4xf32>
    %cst_33 = arith.constant 0.000000e+00 : f32
    %76 = vector.broadcast %cst_33 : f32 to vector<1x4xf32>
    %77 = vector.extract_strided_slice %37 {offsets = [1, 0], sizes = [255, 4], strides = [1, 1]} : vector<256x4xf32> to vector<255x4xf32>
    %78 = tpu.concatenate %77, %76 in 0 : vector<255x4xf32>, vector<1x4xf32> -> vector<256x4xf32>
    %79 = arith.truncf %78 : vector<256x4xf32> to vector<256x4xbf16>
    %c5 = arith.constant 5 : index
    %c0_34 = arith.constant 0 : index
    %c0_35 = arith.constant 0 : index
    %80 = vector.load %arg4[%c5, %c0_34, %c0_35] : memref<9x4x4xbf16, #tpu.memory_space<vmem>>, vector<1x4x4xbf16>
    %81 = vector.shape_cast %80 : vector<1x4x4xbf16> to vector<4x4xbf16>
    %cst_36 = arith.constant dense<0.000000e+00> : vector<256x4xf32>
    %82 = tpu.matmul %79, %81, %cst_36 {dimension_numbers = #tpu.dot_dimension_numbers<[1], [0], [0], [1], [0, 0, 1, 1], [], []>} : vector<256x4xbf16>, vector<4x4xbf16>, vector<256x4xf32> -> vector<256x4xf32>
    %83 = arith.addf %75, %82 : vector<256x4xf32>
    %cst_37 = arith.constant 0.000000e+00 : f32
    %84 = vector.broadcast %cst_37 : f32 to vector<15x4xf32>
    %85 = vector.extract_strided_slice %32 {offsets = [15, 0], sizes = [241, 4], strides = [1, 1]} : vector<256x4xf32> to vector<241x4xf32>
    %86 = tpu.concatenate %85, %84 in 0 : vector<241x4xf32>, vector<15x4xf32> -> vector<256x4xf32>
    %87 = arith.truncf %86 : vector<256x4xf32> to vector<256x4xbf16>
    %c6 = arith.constant 6 : index
    %c0_38 = arith.constant 0 : index
    %c0_39 = arith.constant 0 : index
    %88 = vector.load %arg4[%c6, %c0_38, %c0_39] : memref<9x4x4xbf16, #tpu.memory_space<vmem>>, vector<1x4x4xbf16>
    %89 = vector.shape_cast %88 : vector<1x4x4xbf16> to vector<4x4xbf16>
    %cst_40 = arith.constant dense<0.000000e+00> : vector<256x4xf32>
    %90 = tpu.matmul %87, %89, %cst_40 {dimension_numbers = #tpu.dot_dimension_numbers<[1], [0], [0], [1], [0, 0, 1, 1], [], []>} : vector<256x4xbf16>, vector<4x4xbf16>, vector<256x4xf32> -> vector<256x4xf32>
    %91 = arith.addf %83, %90 : vector<256x4xf32>
    %cst_41 = arith.constant 0.000000e+00 : f32
    %92 = vector.broadcast %cst_41 : f32 to vector<16x4xf32>
    %93 = vector.extract_strided_slice %9 {offsets = [16, 0], sizes = [240, 4], strides = [1, 1]} : vector<256x4xf32> to vector<240x4xf32>
    %94 = tpu.concatenate %93, %92 in 0 : vector<240x4xf32>, vector<16x4xf32> -> vector<256x4xf32>
    %95 = arith.truncf %94 : vector<256x4xf32> to vector<256x4xbf16>
    %c7 = arith.constant 7 : index
    %c0_42 = arith.constant 0 : index
    %c0_43 = arith.constant 0 : index
    %96 = vector.load %arg4[%c7, %c0_42, %c0_43] : memref<9x4x4xbf16, #tpu.memory_space<vmem>>, vector<1x4x4xbf16>
    %97 = vector.shape_cast %96 : vector<1x4x4xbf16> to vector<4x4xbf16>
    %cst_44 = arith.constant dense<0.000000e+00> : vector<256x4xf32>
    %98 = tpu.matmul %95, %97, %cst_44 {dimension_numbers = #tpu.dot_dimension_numbers<[1], [0], [0], [1], [0, 0, 1, 1], [], []>} : vector<256x4xbf16>, vector<4x4xbf16>, vector<256x4xf32> -> vector<256x4xf32>
    %99 = arith.addf %91, %98 : vector<256x4xf32>
    %cst_45 = arith.constant 0.000000e+00 : f32
    %100 = vector.broadcast %cst_45 : f32 to vector<17x4xf32>
    %101 = vector.extract_strided_slice %37 {offsets = [17, 0], sizes = [239, 4], strides = [1, 1]} : vector<256x4xf32> to vector<239x4xf32>
    %102 = tpu.concatenate %101, %100 in 0 : vector<239x4xf32>, vector<17x4xf32> -> vector<256x4xf32>
    %103 = arith.truncf %102 : vector<256x4xf32> to vector<256x4xbf16>
    %c8 = arith.constant 8 : index
    %c0_46 = arith.constant 0 : index
    %c0_47 = arith.constant 0 : index
    %104 = vector.load %arg4[%c8, %c0_46, %c0_47] : memref<9x4x4xbf16, #tpu.memory_space<vmem>>, vector<1x4x4xbf16>
    %105 = vector.shape_cast %104 : vector<1x4x4xbf16> to vector<4x4xbf16>
    %cst_48 = arith.constant dense<0.000000e+00> : vector<256x4xf32>
    %106 = tpu.matmul %103, %105, %cst_48 {dimension_numbers = #tpu.dot_dimension_numbers<[1], [0], [0], [1], [0, 0, 1, 1], [], []>} : vector<256x4xbf16>, vector<4x4xbf16>, vector<256x4xf32> -> vector<256x4xf32>
    %107 = arith.addf %99, %106 : vector<256x4xf32>
    %c0_49 = arith.constant 0 : index
    %c0_50 = arith.constant 0 : index
    %108 = vector.load %arg5[%c0_49, %c0_50] : memref<1x4xf32, #tpu.memory_space<vmem>>, vector<1x4xf32>
    %109 = vector.broadcast %108 : vector<1x4xf32> to vector<256x4xf32>
    %110 = arith.addf %107, %109 : vector<256x4xf32>
    %cst_51 = arith.constant 0.000000e+00 : f32
    %111 = vector.broadcast %cst_51 : f32 to vector<256x4xf32>
    %112 = arith.maximumf %110, %111 : vector<256x4xf32>
    %113 = arith.truncf %112 : vector<256x4xf32> to vector<256x4xbf16>
    %c0_52 = arith.constant 0 : index
    %c0_53 = arith.constant 0 : index
    %114 = vector.load %arg6[%c0_52, %c0_53] : memref<4x16xbf16, #tpu.memory_space<vmem>>, vector<4x16xbf16>
    %cst_54 = arith.constant dense<0.000000e+00> : vector<256x16xf32>
    %115 = tpu.matmul %113, %114, %cst_54 {dimension_numbers = #tpu.dot_dimension_numbers<[1], [0], [0], [1], [0, 0, 1, 1], [], []>} : vector<256x4xbf16>, vector<4x16xbf16>, vector<256x16xf32> -> vector<256x16xf32>
    %c0_55 = arith.constant 0 : index
    %c0_56 = arith.constant 0 : index
    %116 = vector.load %arg7[%c0_55, %c0_56] : memref<1x16xf32, #tpu.memory_space<vmem>>, vector<1x16xf32>
    %117 = vector.broadcast %116 : vector<1x16xf32> to vector<256x16xf32>
    %118 = arith.addf %115, %117 : vector<256x16xf32>
    %c0_57 = arith.constant 0 : index
    %c0_58 = arith.constant 0 : index
    %c0_59 = arith.constant 0 : index
    %119 = vector.load %arg1[%c0_57, %c0_58, %c0_59] : memref<1x256x16xf32, #tpu.memory_space<vmem>>, vector<1x256x16xf32>
    %120 = vector.shape_cast %119 : vector<1x256x16xf32> to vector<256x16xf32>
    %121 = arith.addf %118, %120 : vector<256x16xf32>
    %cst_60 = arith.constant 0.000000e+00 : f32
    %122 = vector.broadcast %cst_60 : f32 to vector<256x16xf32>
    %123 = arith.maximumf %121, %122 : vector<256x16xf32>
    %c0_61 = arith.constant 0 : index
    %c0_62 = arith.constant 0 : index
    %c0_63 = arith.constant 0 : index
    %124 = vector.load %arg8[%c0_61, %c0_62, %c0_63] : memref<1x256x16xf32, #tpu.memory_space<vmem>>, vector<1x256x16xf32>
    %125 = vector.shape_cast %124 : vector<1x256x16xf32> to vector<256x16xf32>
    %126 = vector.shape_cast %123 : vector<256x16xf32> to vector<1x256x16xf32>
    tpu.vector_store %arg8[%c0_61, %c0_62, %c0_63], %126 {strides = array<i32>} : memref<1x256x16xf32, #tpu.memory_space<vmem>>, vector<1x256x16xf32>,
    return
  }
  func.func @transform_0(%arg0: i32) -> (i32, i32, i32) {
    %c0_i32 = arith.constant 0 : i32
    %c0_i32_0 = arith.constant 0 : i32
    %c0_i32_1 = arith.constant 0 : i32
    return %arg0, %c0_i32, %c0_i32_0 : i32, i32, i32
  }
  func.func @transform_1(%arg0: i32) -> (i32, i32) {
    %c0_i32 = arith.constant 0 : i32
    %c0_i32_0 = arith.constant 0 : i32
    %c0_i32_1 = arith.constant 0 : i32
    return %c0_i32, %c0_i32_0 : i32, i32
  }
  func.func @transform_2(%arg0: i32) -> (i32, i32) {
    %c0_i32 = arith.constant 0 : i32
    %c0_i32_0 = arith.constant 0 : i32
    %c0_i32_1 = arith.constant 0 : i32
    return %c0_i32, %c0_i32_0 : i32, i32
  }
  func.func @transform_3(%arg0: i32) -> (i32, i32, i32) {
    %c0_i32 = arith.constant 0 : i32
    %c0_i32_0 = arith.constant 0 : i32
    %c0_i32_1 = arith.constant 0 : i32
    %c0_i32_2 = arith.constant 0 : i32
    return %c0_i32, %c0_i32_0, %c0_i32_1 : i32, i32, i32
  }
  func.func @transform_4(%arg0: i32) -> (i32, i32) {
    %c0_i32 = arith.constant 0 : i32
    %c0_i32_0 = arith.constant 0 : i32
    %c0_i32_1 = arith.constant 0 : i32
    return %c0_i32, %c0_i32_0 : i32, i32
  }
  func.func @transform_5(%arg0: i32) -> (i32, i32) {
    %c0_i32 = arith.constant 0 : i32
    %c0_i32_0 = arith.constant 0 : i32
    %c0_i32_1 = arith.constant 0 : i32
    return %c0_i32, %c0_i32_0 : i32, i32
  }
  func.func @transform_6(%arg0: i32) -> (i32, i32) {
    %c0_i32 = arith.constant 0 : i32
    %c0_i32_0 = arith.constant 0 : i32
    %c0_i32_1 = arith.constant 0 : i32
    return %c0_i32, %c0_i32_0 : i32, i32
  }
  func.func @transform_7(%arg0: i32) -> (i32, i32, i32) {
    %c0_i32 = arith.constant 0 : i32
    %c0_i32_0 = arith.constant 0 : i32
    %c0_i32_1 = arith.constant 0 : i32
    return %arg0, %c0_i32, %c0_i32_0 : i32, i32, i32
  }
}

</mosaic_0001>

<bundles_post_ra>
// kernel: bottleneck_nchw.1
= control target key start
LH: loop header
LB: loop body
LE: loop exit
PB: predicated region body
PF: predicated region fallthrough
CT: control target
= control target key end

     0   :  { %s3396_s24 = smov 0   ;;  %s4866_s0 = inlined_call_operand.vmem [shape: f32[2,256,16], index: 0, kind: input, shape index: {}]   ;;  %s4867_s1 = inlined_call_operand.vmem [shape: bf16[16,4], index: 1, kind: input, shape index: {}]   ;;  %s4868_s2 = inlined_call_operand.vmem [shape: f32[1,4], index: 2, kind: input, shape index: {}]   ;;  %s4869_s3 = inlined_call_operand.vmem [shape: bf16[9,4,4], index: 3, kind: input, shape index: {}]   ;;  %s4870_s4 = inlined_call_operand.vmem [shape: f32[1,4], index: 4, kind: input, shape index: {}]   ;;  %s4871_s5 = inlined_call_operand.vmem [shape: bf16[4,16], index: 5, kind: input, shape index: {}]   ;;  %s4872_s6 = inlined_call_operand.vmem [shape: f32[1,16], index: 6, kind: input, shape index: {}]   ;;  %s4873_s7 = inlined_call_operand.vmem [shape: f32[2,256,16], index: 7, kind: output, shape index: {}]  }
   0x1 LB: > { %s3100_s25 = sadd.s32 4294967295, %s3352_s24   ;;  %p3104_p0 = scmp.ge.s32.totalorder %s3352_s24, 1  ;;  %s3352_s24 = sphi %s3396_s24, %s17_s24  }
   0x2   : > { %p237_p1 = scmp.lt.s32.totalorder %s3352_s24, 3 }
   0x4   : > { %p238_p2 = pnand %p3104_p0, %p237_p1 }
   0x6   : > { %241 = sbr.rel (%p238_p2) target bundleno = 1258 (0x4ea), region = 48 }
   0xb   : > { %v3297_v0 = vld [vmem:[%s4867_s1] sm:$0xff]  ;;  %p269_p3 = scmp.lt.s32.totalorder %s3100_s25, 1  ;;  %vm340_vm0 = vcmask 130048   ;;  %vm1387_vm1 = vcmask 1041408   ;;  %v4874_v21 = vmov 0.0|0.0   ;;  %v510_v30 = vlaneseq }
   0xc   : > { %396 = vmatpush.bf16.msra.mxu0 %v3297_v0  ;;  %3298 = vmatpush.bf16.msra.mxu3 %v3297_v0  ;;  %v3129_v19 = vld [vmem:[%s4869_s3 + $0x2] sm:$0x3]  ;;  %v1320_v24 = vld [vmem:[%s4869_s3] sm:$0x3]  ;;  %vm1338_vm4 = vcmask 31744   ;;  %vm1213_vm5 = vcmask 1040384  }
   0xd   : > { %s5104_s25 = smov (!%p269_p3, %s3100_s25), 1  ;;  %v1389_v20 = vsel %vm1387_vm1, %v3129_v19, 0  ;;  %v1526_v26 = vsel %vm1387_vm1, %v1320_v24, 0  ;;  %v3456_v33 = vld [vmem:[%s4868_s2] ss:$0 sm:$0xff]  ;;  %v3458_v34 = vshrl.u32 %v510_v30, 7 }
   0xe   : > { %s3295_s28 = sshll.u32 %s5104_s25, 8  ;;  %1398 = vmatpush.bf16.msra.mxu1 %v1389_v20  ;;  %1535 = vmatpush.bf16.msra.mxu2 %v1526_v26  ;;  %vm1648_vm6 = vcmask 1046528  }
   0xf   : > { %s3415_s8 = scalar_lea.vmem %s4866_s0, %s3295_s28  ;;  %v512_v38 = vadd.s32 8, %v3458_v34  ;;  %v547_v41 = vand.u32 15, %v3458_v34  ;;  %v513_v48 = vadd.s32 16, %v3458_v34  ;;  %s4669_s18 = scalar_lea.vmem %s4873_s7, %s3295_s28 }
  0x10   : > { %v280_v1 = vld [vmem:[%s3415_s8] sm:$0xff]  ;;  %v281_v2 = vld [vmem:[%s3415_s8 + $0x8] sm:$0xff]  ;;  %v282_v4 = vld [vmem:[%s3415_s8 + $0x10] sm:$0xff]  ;;  %3299 = vmatpush.bf16.msrb.mxu3 %v1389_v20 }
  0x11   : > { %v312_v3 = vpack.c.bf16 %v281_v2, %v280_v1  ;;  %v283_v5 = vld [vmem:[%s3415_s8 + $0x18] sm:$0xff]  ;;  %v284_v7 = vld [vmem:[%s3415_s8 + $0x20] sm:$0xff]  ;;  %v285_v8 = vld [vmem:[%s3415_s8 + $0x28] sm:$0xff]  ;;  %1399 = vmatmul.bf16.vlgmr.msra.gmra.mxu1 %v4874_v21  ;;  %1536 = vmatmul.bf16.vlgmr.msra.gmra.mxu2 %v4874_v21  ;;  %v554_v44 = vand.u32 15, %v512_v38  ;;  %vm1055_vm2 = vcmp.gt.s32.totalorder %v547_v41, 0  ;;  %v561_v58 = vand.u32 15, %v513_v48 }
  0x12   : > { %v313_v6 = vpack.c.bf16 %v283_v5, %v282_v4  ;;  %v314_v9 = vpack.c.bf16 %v285_v8, %v284_v7  ;;  %v286_v10 = vld [vmem:[%s3415_s8 + $0x30] sm:$0xff]  ;;  %v287_v11 = vld [vmem:[%s3415_s8 + $0x38] sm:$0xff]  ;;  %v288_v13 = vld [vmem:[%s3415_s8 + $0x40] sm:$0xff]  ;;  %v514_v2 = vadd.s32 24, %v3458_v34  ;;  %v517_v48 = vadd.s32 48, %v3458_v34 }
  0x13   : > { %3113 = vmatmul.msk.bf16.vlgmr.msra.gmra.mxu0 %vm340_vm0, %v312_v3  ;;  %v315_v12 = vpack.c.bf16 %v287_v11, %v286_v10  ;;  %v289_v14 = vld [vmem:[%s3415_s8 + $0x48] sm:$0xff]  ;;  %v290_v16 = vld [vmem:[%s3415_s8 + $0x50] sm:$0xff]  ;;  %v291_v17 = vld [vmem:[%s3415_s8 + $0x58] sm:$0xff]  ;;  %vm928_vm3 = vcmp.lt.s32.totalorder %v554_v44, 15  ;;  %vm1057_vm7 = vcmp.gt.s32.totalorder %v561_v58, 0 }
  0x14   : > { %v316_v15 = vpack.c.bf16 %v289_v14, %v288_v13  ;;  %v317_v18 = vpack.c.bf16 %v291_v17, %v290_v16  ;;  %v292_v22 = vld [vmem:[%s3415_s8 + $0x60] sm:$0xff]  ;;  %v293_v23 = vld [vmem:[%s3415_s8 + $0x68] sm:$0xff]  ;;  %v294_v27 = vld [vmem:[%s3415_s8 + $0x70] sm:$0xff]  ;;  %v515_v14 = vadd.s32 32, %v3458_v34 }
  0x15   : > { %v318_v25 = vpack.c.bf16 %v293_v23, %v292_v22  ;;  %v295_v28 = vld [vmem:[%s3415_s8 + $0x78] sm:$0xff]  ;;  %v296_v31 = vld [vmem:[%s3415_s8 + $0x80] sm:$0xff]  ;;  %v297_v32 = vld [vmem:[%s3415_s8 + $0x88] sm:$0xff] }
  0x16   : > { %v319_v29 = vpack.c.bf16 %v295_v28, %v294_v27  ;;  %v320_v35 = vpack.c.bf16 %v297_v32, %v296_v31  ;;  %v304_v39 = vld [vmem:[%s3415_s8 + $0xc0] sm:$0xff]  ;;  %v305_v40 = vld [vmem:[%s3415_s8 + $0xc8] sm:$0xff]  ;;  %v298_v51 = vld [vmem:[%s3415_s8 + $0x90] sm:$0xff]  ;;  %v575_v24 = vand.u32 15, %v515_v14 }
  0x17   : > { %v324_v42 = vpack.c.bf16 %v305_v40, %v304_v39  ;;  %v299_v52 = vld [vmem:[%s3415_s8 + $0x98] sm:$0xff]  ;;  %v306_v3 = vld [vmem:[%s3415_s8 + $0xd0] sm:$0xff]  ;;  %v300_v17 = vld [vmem:[%s3415_s8 + $0xa0] sm:$0xff] }
  0x18   : > { %v321_v60 = vpack.c.bf16 %v299_v52, %v298_v51  ;;  %v307_v4 = vld [vmem:[%s3415_s8 + $0xd8] sm:$0xff]  ;;  %vm1059_vm9 = vcmp.gt.s32.totalorder %v575_v24, 0  ;;  %v309_v38 = vld [vmem:[%s3415_s8 + $0xe8] sm:$0xff]  ;;  %v302_v51 = vld [vmem:[%s3415_s8 + $0xb0] sm:$0xff] }
  0x19   : > { %3125 = vmatmul.msk.bf16.vlgmr.msra.gmra.mxu3 %vm340_vm0, %v324_v42  ;;  %v303_v52 = vld [vmem:[%s3415_s8 + $0xb8] sm:$0xff] }
  0x1a   : > { %3300 = vmatpush.bf16.msra.mxu3 %v1526_v26 }
  0x23   : > { %3114 = vmatmul.msk.bf16.gmra.mxu0 %vm340_vm0, %v313_v6  ;;  %v325_v6 = vpack.c.bf16 %v307_v4, %v306_v3  ;;  %v518_v4 = vadd.s32 56, %v3458_v34 }
  0x29   : > { %3126 = vmatmul.msk.bf16.gmra.mxu3 %vm340_vm0, %v325_v6  ;;  %v311_v6 = vld [vmem:[%s3415_s8 + $0xf8] sm:$0xff] }
  0x33   : > { %3115 = vmatmul.msk.bf16.gmra.mxu0 %vm340_vm0, %v314_v9  ;;  %v568_v9 = vand.u32 15, %v514_v2 }
  0x35   : > { %vm930_vm8 = vcmp.lt.s32.totalorder %v568_v9, 15 }
  0x43   : > { %3116 = vmatmul.msk.bf16.gmra.mxu0 %vm340_vm0, %v315_v12 }
  0x53   : > { %3117 = vmatmul.msk.bf16.gmra.mxu0 %vm340_vm0, %v316_v15 }
  0x63   : > { %3118 = vmatmul.msk.bf16.gmra.mxu0 %vm340_vm0, %v317_v18  ;;  %v301_v18 = vld [vmem:[%s3415_s8 + $0xa8] sm:$0xff] }
  0x64   : > { %v322_v26 = vpack.c.bf16 %v301_v18, %v300_v17  ;;  %v519_v17 = vadd.s32 64, %v3458_v34 }
  0x73   : > { %3119 = vmatmul.msk.bf16.gmra.mxu0 %vm340_vm0, %v318_v25  ;;  %v3177_v25 = vld [vmem:[%s4869_s3 + $0x6] sm:$0x3] }
  0x74   : > { %v1947_v27 = vsel %vm1387_vm1, %v3177_v25, 0 }
  0x75   : > { %1956 = vmatpush.bf16.msrb.mxu0 %v1947_v27 }
  0x83   : > { %3120 = vmatmul.msk.bf16.gmra.mxu0 %vm340_vm0, %v319_v29 }
  0x90   : > { %v398_v36 = vpop.f32.mrf.mxu0 }
  0x91   : > { %v399_v37 = vadd.f32 %v3456_v33, %v398_v36  ;;  %v516_v36 = vadd.s32 40, %v3458_v34 }
  0x93   : > { %3121 = vmatmul.msk.bf16.gmra.mxu0 %vm340_vm0, %v320_v35  ;;  %v478_v43 = vmax.f32 %v399_v37, 0.0  ;;  %v308_v37 = vld [vmem:[%s3415_s8 + $0xe0] sm:$0xff] }
  0x94   : > { %v326_v40 = vpack.c.bf16 %v309_v38, %v308_v37 }
  0x95   : > { %v1151_v47 = vsel %vm1055_vm2, %v478_v43, 0.0  ;;  %v1214_v50 = vrot.slane %v478_v43, 7 }
  0x96   : > { %v3471_v53 = vrot.slane %v1151_v47, 1  ;;  %3127 = vmatmul.msk.bf16.gmra.mxu3 %vm340_vm0, %v326_v40 }
  0x97   : > { %v1303_v63 = vsel %vm1213_vm5, 0.0, %v1214_v50 }
  0x98   : > { %v400_v45 = vpop.f32.mrf.mxu0 }
  0x99   : > { %v401_v46 = vadd.f32 %v3456_v33, %v400_v45 }
  0x9b   : > { %v479_v49 = vmax.f32 %v401_v46, 0.0 }
  0x9d   : > { %v1024_v54 = vsel %vm928_vm3, %v479_v49, 0.0  ;;  %v1650_v55 = vrot.slane %v479_v49, 1  ;;  %v3473_v56 = vpack.c.bf16 %v479_v49, %v478_v43  ;;  %v582_v43 = vand.u32 15, %v516_v36 }
  0x9e   : > { %v1215_v57 = vrot.slane %v1024_v54, 7  ;;  %v520_v36 = vadd.s32 72, %v3458_v34 }
  0x9f   : > { %v1651_v59 = vsel %vm1648_vm6, %v3471_v53, %v1650_v55  ;;  %3130 = vmatmul.msk.bf16.gmra.mxu1 %vm1338_vm4, %v3473_v56  ;;  %vm932_vm10 = vcmp.lt.s32.totalorder %v582_v43, 15 }
  0xa0   : > { %v403_v61 = vpop.f32.mrf.mxu0  ;;  %v1216_v62 = vsel %vm1213_vm5, %v1214_v50, %v1215_v57  ;;  %v610_v40 = vand.u32 15, %v520_v36 }
  0xa1   : > { %v404_v0 = vadd.f32 %v3456_v33, %v403_v61  ;;  %v3482_v1 = vpack.c.bf16 %v1216_v62, %v1303_v63 }
  0xa2   : > { %vm936_vm14 = vcmp.lt.s32.totalorder %v610_v40, 15 }
  0xa3   : > { %v480_v5 = vmax.f32 %v404_v0, 0.0  ;;  %3122 = vmatmul.msk.bf16.gmra.mxu0 %vm340_vm0, %v321_v60  ;;  %3145 = vmatmul.msk.bf16.gmra.mxu2 %vm1338_vm4, %v3482_v1  ;;  %v323_v60 = vpack.c.bf16 %v303_v52, %v302_v51 }
  0xa5   : > { %v1153_v7 = vsel %vm1057_vm7, %v480_v5, 0.0  ;;  %v1217_v16 = vrot.slane %v480_v5, 7 }
  0xa6   : > { %v1652_v8 = vrot.slane %v1153_v7, 1 }
  0xa7   : > { %v1218_v30 = vsel %vm1213_vm5, %v1215_v57, %v1217_v16 }
  0xa8   : > { %v1653_v10 = vsel %vm1648_vm6, %v1650_v55, %v1652_v8  ;;  %v405_v11 = vpop.f32.mrf.mxu0 }
  0xa9   : > { %v3492_v12 = vpack.c.bf16 %v1653_v10, %v1651_v59  ;;  %v406_v13 = vadd.f32 %v3456_v33, %v405_v11  ;;  %v589_v59 = vand.u32 15, %v517_v48  ;;  %v596_v11 = vand.u32 15, %v518_v4 }
  0xab   : > { %v481_v15 = vmax.f32 %v406_v13, 0.0  ;;  %vm1061_vm11 = vcmp.gt.s32.totalorder %v589_v59, 0  ;;  %vm934_vm12 = vcmp.lt.s32.totalorder %v596_v11, 15 }
  0xad   : > { %v1026_v19 = vsel %vm930_vm8, %v481_v15, 0.0  ;;  %v1654_v20 = vrot.slane %v481_v15, 1  ;;  %v3498_v22 = vpack.c.bf16 %v481_v15, %v480_v5  ;;  %v310_v5 = vld [vmem:[%s3415_s8 + $0xf0] sm:$0xff] }
  0xae   : > { %v1219_v23 = vrot.slane %v1026_v19, 7 }
  0xaf   : > { %3131 = vmatmul.msk.bf16.gmra.mxu1 %vm1338_vm4, %v3498_v22  ;;  %v1655_v28 = vsel %vm1648_vm6, %v1652_v8, %v1654_v20  ;;  %v327_v8 = vpack.c.bf16 %v311_v6, %v310_v5 }
  0xb0   : > { %v408_v29 = vpop.f32.mrf.mxu0  ;;  %v1220_v31 = vsel %vm1213_vm5, %v1217_v16, %v1219_v23 }
  0xb1   : > { %v409_v32 = vadd.f32 %v3456_v33, %v408_v29  ;;  %v3510_v35 = vpack.c.bf16 %v1220_v31, %v1218_v30  ;;  %3128 = vmatmul.msk.bf16.gmra.mxu3 %vm340_vm0, %v327_v8 }
  0xb3   : > { %4892 = vst [vmem:[#allocation2_spill] sm:$0xff] %v3510_v35  ;;  %v482_v39 = vmax.f32 %v409_v32, 0.0  ;;  %3123 = vmatmul.msk.bf16.gmra.mxu0 %vm340_vm0, %v322_v26  ;;  %3146 = vmatmul.msk.bf16.gmra.mxu2 %vm1338_vm4, %v3510_v35  ;;  %v603_v26 = vand.u32 15, %v519_v17 }
  0xb5   : > { %v1155_v41 = vsel %vm1059_vm9, %v482_v39, 0.0  ;;  %v1221_v50 = vrot.slane %v482_v39, 7  ;;  %vm1063_vm13 = vcmp.gt.s32.totalorder %v603_v26, 0 }
  0xb6   : > { %v1656_v42 = vrot.slane %v1155_v41, 1 }
  0xb7   : > { %v1222_v63 = vsel %vm1213_vm5, %v1219_v23, %v1221_v50 }
  0xb8   : > { %v410_v44 = vpop.f32.mrf.mxu0  ;;  %v1657_v45 = vsel %vm1648_vm6, %v1654_v20, %v1656_v42 }
  0xb9   : > { %v411_v46 = vadd.f32 %v3456_v33, %v410_v44  ;;  %v3521_v47 = vpack.c.bf16 %v1657_v45, %v1655_v28  ;;  %v521_v45 = vadd.s32 80, %v3458_v34 }
  0xbb   : > { %v483_v49 = vmax.f32 %v411_v46, 0.0  ;;  %v617_v52 = vand.u32 15, %v521_v45  ;;  %v525_v45 = vadd.s32 112, %v3458_v34 }
  0xbd   : > { %v1028_v54 = vsel %vm932_vm10, %v483_v49, 0.0  ;;  %v1658_v55 = vrot.slane %v483_v49, 1  ;;  %v3526_v57 = vpack.c.bf16 %v483_v49, %v482_v39  ;;  %vm1065_vm15 = vcmp.gt.s32.totalorder %v617_v52, 0 }
  0xbe   : > { %v1223_v58 = vrot.slane %v1028_v54, 7 }
  0xbf   : > { %3132 = vmatmul.msk.bf16.gmra.mxu1 %vm1338_vm4, %v3526_v57  ;;  %v1659_v61 = vsel %vm1648_vm6, %v1656_v42, %v1658_v55 }
  0xc0   : > { %v413_v62 = vpop.f32.mrf.mxu0  ;;  %v1224_v0 = vsel %vm1213_vm5, %v1221_v50, %v1223_v58 }
  0xc1   : > { %v414_v2 = vadd.f32 %v3456_v33, %v413_v62  ;;  %v3534_v3 = vpack.c.bf16 %v1224_v0, %v1222_v63  ;;  %v522_v62 = vadd.s32 88, %v3458_v34 }
  0xc3   : > { %4893 = vst [vmem:[#allocation3_spill] sm:$0xff] %v3534_v3  ;;  %v484_v7 = vmax.f32 %v414_v2, 0.0  ;;  %3124 = vmatmul.msk.bf16.gmra.mxu0 %vm340_vm0, %v323_v60  ;;  %3147 = vmatmul.msk.bf16.gmra.mxu2 %vm1338_vm4, %v3534_v3  ;;  %v624_v4 = vand.u32 15, %v522_v62 }
  0xc5   : > { %v1157_v9 = vsel %vm1061_vm11, %v484_v7, 0.0  ;;  %v1225_v19 = vrot.slane %v484_v7, 7  ;;  %vm938_vm2 = vcmp.lt.s32.totalorder %v624_v4, 15  ;;  %v526_v4 = vadd.s32 120, %v3458_v34 }
  0xc6   : > { %v1660_v10 = vrot.slane %v1157_v9, 1  ;;  %v523_v9 = vadd.s32 96, %v3458_v34 }
  0xc7   : > { %v1226_v29 = vsel %vm1213_vm5, %v1223_v58, %v1225_v19 }
  0xc8   : > { %v415_v13 = vpop.f32.mrf.mxu0  ;;  %v1661_v14 = vsel %vm1648_vm6, %v1658_v55, %v1660_v10 }
  0xc9   : > { %v416_v15 = vadd.f32 %v3456_v33, %v415_v13  ;;  %v3545_v16 = vpack.c.bf16 %v1661_v14, %v1659_v61 }
  0xcb   : > { %v485_v18 = vmax.f32 %v416_v15, 0.0 }
  0xcd   : > { %v1030_v20 = vsel %vm934_vm12, %v485_v18, 0.0  ;;  %v1662_v23 = vrot.slane %v485_v18, 1  ;;  %v3548_v24 = vpack.c.bf16 %v485_v18, %v484_v7  ;;  %v631_v18 = vand.u32 15, %v523_v9 }
  0xce   : > { %v1227_v25 = vrot.slane %v1030_v20, 7  ;;  %v652_v9 = vand.u32 15, %v526_v4 }
  0xcf   : > { %3133 = vmatmul.msk.bf16.gmra.mxu1 %vm1338_vm4, %v3548_v24  ;;  %v1663_v27 = vsel %vm1648_vm6, %v1660_v10, %v1662_v23  ;;  %vm1067_vm3 = vcmp.gt.s32.totalorder %v631_v18, 0 }
  0xd0   : > { %v418_v28 = vpop.f32.mrf.mxu0  ;;  %v1228_v30 = vsel %vm1213_vm5, %v1225_v19, %v1227_v25  ;;  %vm942_vm9 = vcmp.lt.s32.totalorder %v652_v9, 15 }
  0xd1   : > { %v419_v31 = vadd.f32 %v3456_v33, %v418_v28  ;;  %v3556_v32 = vpack.c.bf16 %v1228_v30, %v1226_v29  ;;  %v524_v28 = vadd.s32 104, %v3458_v34 }
  0xd3   : > { %4894 = vst [vmem:[#allocation4_spill] sm:$0xff] %v3556_v32  ;;  %v486_v37 = vmax.f32 %v419_v31, 0.0  ;;  %3148 = vmatmul.msk.bf16.gmra.mxu2 %vm1338_vm4, %v3556_v32  ;;  %3178 = vmatmul.msk.bf16.vlgmr.msrb.gmra.mxu0 %vm1338_vm4, %v3482_v1  ;;  %v638_v36 = vand.u32 15, %v524_v28 }
  0xd5   : > { %v1159_v38 = vsel %vm1063_vm13, %v486_v37, 0.0  ;;  %v1229_v48 = vrot.slane %v486_v37, 7  ;;  %vm940_vm7 = vcmp.lt.s32.totalorder %v638_v36, 15 }
  0xd6   : > { %v1664_v39 = vrot.slane %v1159_v38, 1  ;;  %v1537_v38 = vpop.f32.mrf.mxu2 }
  0xd7   : > { %v1230_v58 = vsel %vm1213_vm5, %v1227_v25, %v1229_v48 }
  0xd8   : > { %v420_v41 = vpop.f32.mrf.mxu0  ;;  %v1665_v42 = vsel %vm1648_vm6, %v1662_v23, %v1664_v39 }
  0xd9   : > { %v421_v43 = vadd.f32 %v3456_v33, %v420_v41  ;;  %v3565_v44 = vpack.c.bf16 %v1665_v42, %v1663_v27 }
  0xdb   : > { %v487_v46 = vmax.f32 %v421_v43, 0.0 }
  0xdd   : > { %v1032_v49 = vsel %vm936_vm14, %v487_v46, 0.0  ;;  %v1666_v50 = vrot.slane %v487_v46, 1  ;;  %v3568_v51 = vpack.c.bf16 %v487_v46, %v486_v37  ;;  %v1400_v37 = vpop.f32.mrf.mxu1 }
  0xde   : > { %v1231_v1 = vrot.slane %v1032_v49, 7 }
  0xdf   : > { %3134 = vmatmul.msk.bf16.gmra.mxu1 %vm1338_vm4, %v3568_v51  ;;  %v1667_v54 = vsel %vm1648_vm6, %v1664_v39, %v1666_v50  ;;  %v3603_v39 = vadd.f32 %v1537_v38, %v1400_v37 }
  0xe0   : > { %v423_v55 = vpop.f32.mrf.mxu0  ;;  %v1232_v59 = vsel %vm1213_vm5, %v1229_v48, %v1231_v1 }
  0xe1   : > { %v424_v60 = vadd.f32 %v3456_v33, %v423_v55  ;;  %v3576_v61 = vpack.c.bf16 %v1232_v59, %v1230_v58  ;;  %v3194_v55 = vld [vmem:[%s4869_s3 + $0x8] sm:$0x3] }
  0xe2   : > { %v2077_v58 = vsel %vm1387_vm1, %v3194_v55, 0 }
  0xe3   : > { %4895 = vst [vmem:[#allocation5_spill] sm:$0xff] %v3576_v61  ;;  %v488_v63 = vmax.f32 %v424_v60, 0.0  ;;  %3149 = vmatmul.msk.bf16.gmra.mxu2 %vm1338_vm4, %v3576_v61  ;;  %3179 = vmatmul.msk.bf16.gmra.mxu0 %vm1338_vm4, %v3510_v35 }
  0xe4   : > { %2086 = vmatpush.bf16.msrb.mxu1 %v2077_v58  ;;  %v529_v58 = vadd.s32 144, %v3458_v34 }
  0xe5   : > { %v1161_v0 = vsel %vm1065_vm15, %v488_v63, 0.0  ;;  %v1233_v11 = vrot.slane %v488_v63, 7 }
  0xe6   : > { %v1668_v2 = vrot.slane %v1161_v0, 1 }
  0xe7   : > { %v1234_v23 = vsel %vm1213_vm5, %v1231_v1, %v1233_v11 }
  0xe8   : > { %v425_v5 = vpop.f32.mrf.mxu0  ;;  %v1669_v6 = vsel %vm1648_vm6, %v1666_v50, %v1668_v2 }
  0xe9   : > { %v426_v7 = vadd.f32 %v3456_v33, %v425_v5  ;;  %v3585_v8 = vpack.c.bf16 %v1669_v6, %v1667_v54  ;;  %v645_v54 = vand.u32 15, %v525_v45 }
  0xeb   : > { %v489_v10 = vmax.f32 %v426_v7, 0.0  ;;  %vm1069_vm8 = vcmp.gt.s32.totalorder %v645_v54, 0 }
  0xed   : > { %v1034_v13 = vsel %vm938_vm2, %v489_v10, 0.0  ;;  %v1670_v14 = vrot.slane %v489_v10, 1  ;;  %v3588_v15 = vpack.c.bf16 %v489_v10, %v488_v63 }
  0xee   : > { %v1235_v17 = vrot.slane %v1034_v13, 7 }
  0xef   : > { %3135 = vmatmul.msk.bf16.gmra.mxu1 %vm1338_vm4, %v3588_v15  ;;  %v1671_v19 = vsel %vm1648_vm6, %v1668_v2, %v1670_v14 }
  0xf0   : > { %v428_v20 = vpop.f32.mrf.mxu0  ;;  %v1236_v25 = vsel %vm1213_vm5, %v1233_v11, %v1235_v17 }
  0xf1   : > { %v429_v26 = vadd.f32 %v3456_v33, %v428_v20  ;;  %v3596_v27 = vpack.c.bf16 %v1236_v25, %v1234_v23 }
  0xf3   : > { %4896 = vst [vmem:[#allocation6_spill] sm:$0xff] %v3596_v27  ;;  %v490_v29 = vmax.f32 %v429_v26, 0.0  ;;  %3150 = vmatmul.msk.bf16.gmra.mxu2 %vm1338_vm4, %v3596_v27  ;;  %3180 = vmatmul.msk.bf16.gmra.mxu0 %vm1338_vm4, %v3534_v3 }
  0xf5   : > { %v1163_v30 = vsel %vm1067_vm3, %v490_v29, 0.0  ;;  %v1237_v48 = vrot.slane %v490_v29, 7 }
  0xf6   : > { %v1672_v31 = vrot.slane %v1163_v30, 1 }
  0xf7   : > { %v1238_v62 = vsel %vm1213_vm5, %v1235_v17, %v1237_v48  ;;  %v527_v17 = vadd.s32 128, %v3458_v34 }
  0xf8   : > { %v430_v40 = vpop.f32.mrf.mxu0  ;;  %v1673_v41 = vsel %vm1648_vm6, %v1670_v14, %v1672_v31 }
  0xf9   : > { %v431_v42 = vadd.f32 %v3456_v33, %v430_v40  ;;  %v3607_v43 = vpack.c.bf16 %v1673_v41, %v1671_v19  ;;  %v659_v28 = vand.u32 15, %v527_v17  ;;  %v3644_v40 = vpop.f32.mrf.mxu1  ;;  %v528_v41 = vadd.s32 136, %v3458_v34 }
  0xfa   : > { %4899 = vst [vmem:[#allocation9_spill] sm:$0xff] %v3644_v40 }
  0xfb   : > { %v491_v46 = vmax.f32 %v431_v42, 0.0  ;;  %vm1071_vm10 = vcmp.gt.s32.totalorder %v659_v28, 0 }
  0xfd   : > { %v1036_v49 = vsel %vm940_vm7, %v491_v46, 0.0  ;;  %v1674_v50 = vrot.slane %v491_v46, 1  ;;  %v3610_v1 = vpack.c.bf16 %v491_v46, %v490_v29 }
  0xfe   : > { %v1239_v52 = vrot.slane %v1036_v49, 7 }
  0xff   : > { %3136 = vmatmul.msk.bf16.gmra.mxu1 %vm1338_vm4, %v3610_v1  ;;  %v1675_v59 = vsel %vm1648_vm6, %v1672_v31, %v1674_v50 }
 0x100   : > { %v433_v60 = vpop.f32.mrf.mxu0  ;;  %v1240_v63 = vsel %vm1213_vm5, %v1237_v48, %v1239_v52  ;;  %v666_v48 = vand.u32 15, %v528_v41 }
 0x101   : > { %v434_v0 = vadd.f32 %v3456_v33, %v433_v60  ;;  %v3622_v2 = vpack.c.bf16 %v1240_v63, %v1238_v62  ;;  %v3656_v63 = vpop.f32.mrf.mxu2 }
 0x102   : > { %vm944_vm11 = vcmp.lt.s32.totalorder %v666_v48, 15  ;;  %4900 = vst [vmem:[#allocation10_spill] sm:$0xff] %v3656_v63 }
 0x103   : > { %4897 = vst [vmem:[#allocation7_spill] sm:$0xff] %v3622_v2  ;;  %v492_v5 = vmax.f32 %v434_v0, 0.0  ;;  %3151 = vmatmul.msk.bf16.gmra.mxu2 %vm1338_vm4, %v3622_v2  ;;  %3181 = vmatmul.msk.bf16.gmra.mxu0 %vm1338_vm4, %v3556_v32 }
 0x105   : > { %v1165_v6 = vsel %vm1069_vm8, %v492_v5, 0.0  ;;  %v1241_v19 = vrot.slane %v492_v5, 7 }
 0x106   : > { %v1676_v7 = vrot.slane %v1165_v6, 1 }
 0x107   : > { %v1242_v31 = vsel %vm1213_vm5, %v1239_v52, %v1241_v19 }
 0x108   : > { %v435_v10 = vpop.f32.mrf.mxu0  ;;  %v1677_v11 = vsel %vm1648_vm6, %v1674_v50, %v1676_v7  ;;  %v458_v50 = vpop.f32.mrf.mxu3 }
 0x109   : > { %v436_v13 = vadd.f32 %v3456_v33, %v435_v10  ;;  %v3631_v14 = vpack.c.bf16 %v1677_v11, %v1675_v59 }
 0x10b   : > { %v493_v18 = vmax.f32 %v436_v13, 0.0 }
 0x10d   : > { %v1038_v20 = vsel %vm942_vm9, %v493_v18, 0.0  ;;  %v1678_v23 = vrot.slane %v493_v18, 1  ;;  %v3634_v25 = vpack.c.bf16 %v493_v18, %v492_v5 }
 0x10e   : > { %v1243_v26 = vrot.slane %v1038_v20, 7  ;;  %v530_v20 = vadd.s32 152, %v3458_v34 }
 0x10f   : > { %3137 = vmatmul.msk.bf16.gmra.mxu1 %vm1338_vm4, %v3634_v25  ;;  %v1679_v29 = vsel %vm1648_vm6, %v1676_v7, %v1678_v23  ;;  %v673_v7 = vand.u32 15, %v529_v58 }
 0x110   : > { %v438_v30 = vpop.f32.mrf.mxu0  ;;  %v1244_v36 = vsel %vm1213_vm5, %v1241_v19, %v1243_v26  ;;  %v460_v17 = vpop.f32.mrf.mxu3 }
 0x111   : > { %v439_v37 = vadd.f32 %v3456_v33, %v438_v30  ;;  %v3642_v38 = vpack.c.bf16 %v1244_v36, %v1242_v31  ;;  %vm1073_vm12 = vcmp.gt.s32.totalorder %v673_v7, 0  ;;  %v680_v31 = vand.u32 15, %v530_v20  ;;  %v3211_v20 = vld [vmem:[%s4869_s3 + $0xa] sm:$0x3] }
 0x113   : > { %4898 = vst [vmem:[#allocation8_spill] sm:$0xff] %v3642_v38  ;;  %v494_v42 = vmax.f32 %v439_v37, 0.0  ;;  %3152 = vmatmul.msk.bf16.gmra.mxu2 %vm1338_vm4, %v3642_v38  ;;  %3182 = vmatmul.msk.bf16.gmra.mxu0 %vm1338_vm4, %v3576_v61  ;;  %v535_v37 = vadd.s32 192, %v3458_v34  ;;  %vm946_vm13 = vcmp.lt.s32.totalorder %v680_v31, 15 }
 0x115   : > { %v1167_v45 = vsel %vm1071_vm10, %v494_v42, 0.0  ;;  %v1245_v60 = vrot.slane %v494_v42, 7  ;;  %v715_v58 = vand.u32 15, %v535_v37 }
 0x116   : > { %v1680_v46 = vrot.slane %v1167_v45, 1 }
 0x117   : > { %v1246_v11 = vsel %vm1213_vm5, %v1243_v26, %v1245_v60  ;;  %vm3698_vm14 = vcmp.gt.s32.totalorder %v715_v58, 0 }
 0x118   : > { %v440_v49 = vpop.f32.mrf.mxu0  ;;  %v1681_v52 = vsel %vm1648_vm6, %v1678_v23, %v1680_v46  ;;  %v463_v45 = vpop.f32.mrf.mxu3 }
 0x119   : > { %v441_v54 = vadd.f32 %v3456_v33, %v440_v49  ;;  %v3653_v55 = vpack.c.bf16 %v1681_v52, %v1679_v29  ;;  %v459_v49 = vadd.f32 %v3456_v33, %v458_v50  ;;  %v464_v50 = vadd.f32 %v3456_v33, %v463_v45 }
 0x11b   : > { %v495_v59 = vmax.f32 %v441_v54, 0.0 }
 0x11c   : > { %v1405_v62 = vpop.f32.mrf.mxu1 }
 0x11d   : > { %v1040_v0 = vsel %vm944_vm11, %v495_v59, 0.0  ;;  %v1682_v4 = vrot.slane %v495_v59, 1  ;;  %v3658_v5 = vpack.c.bf16 %v495_v59, %v494_v42  ;;  %v531_v42 = vadd.s32 160, %v3458_v34 }
 0x11e   : > { %v1247_v6 = vrot.slane %v1040_v0, 7 }
 0x11f   : > { %3138 = vmatmul.msk.bf16.gmra.mxu1 %vm1338_vm4, %v3658_v5  ;;  %v1683_v9 = vsel %vm1648_vm6, %v1680_v46, %v1682_v4 }
 0x120   : > { %v443_v10 = vpop.f32.mrf.mxu0  ;;  %v1248_v13 = vsel %vm1213_vm5, %v1245_v60, %v1247_v6  ;;  %v465_v45 = vpop.f32.mrf.mxu3 }
 0x121   : > { %v444_v18 = vadd.f32 %v3456_v33, %v443_v10  ;;  %v3666_v19 = vpack.c.bf16 %v1248_v13, %v1246_v11  ;;  %v3684_v11 = vmax.f32 %v459_v49, 0.0  ;;  %v532_v49 = vadd.s32 168, %v3458_v34 }
 0x123   : > { %4901 = vst [vmem:[#allocation11_spill] sm:$0xff] %v3666_v19  ;;  %v496_v23 = vmax.f32 %v444_v18, 0.0  ;;  %3153 = vmatmul.msk.bf16.gmra.mxu2 %vm1338_vm4, %v3666_v19  ;;  %3183 = vmatmul.msk.bf16.gmra.mxu0 %vm1338_vm4, %v3596_v27  ;;  %v461_v18 = vadd.f32 %v3456_v33, %v460_v17 }
 0x124   : > { %v1407_v28 = vpop.f32.mrf.mxu1 }
 0x125   : > { %v1169_v29 = vsel %vm1073_vm12, %v496_v23, 0.0  ;;  %v1249_v59 = vrot.slane %v496_v23, 7 }
 0x126   : > { %v1684_v26 = vrot.slane %v1169_v29, 1  ;;  %v1542_v30 = vpop.f32.mrf.mxu2 }
 0x127   : > { %v3673_v36 = vadd.f32 %v1542_v30, %v1405_v62  ;;  %v687_v62 = vand.u32 15, %v531_v42  ;;  %v2213_v30 = vsel %vm1387_vm1, %v3211_v20, 0  ;;  %v1250_v37 = vsel %vm1213_vm5, %v1247_v6, %v1249_v59 }
 0x128   : > { %v445_v41 = vpop.f32.mrf.mxu0  ;;  %v1685_v46 = vsel %vm1648_vm6, %v1682_v4, %v1684_v26  ;;  %v3707_v42 = vmax.f32 %v464_v50, 0.0  ;;  %2222 = vmatpush.bf16.msrb.mxu2 %v2213_v30  ;;  %v1175_v6 = vsel %vm3698_vm14, %v3684_v11, 0.0  ;;  %v694_v50 = vand.u32 15, %v532_v49 }
 0x129   : > { %v446_v48 = vadd.f32 %v3456_v33, %v445_v41  ;;  %v3680_v52 = vpack.c.bf16 %v1685_v46, %v1683_v9  ;;  %v537_v9 = vadd.s32 208, %v3458_v34  ;;  %vm1075_vm15 = vcmp.gt.s32.totalorder %v687_v62, 0 }
 0x12a   : > { %vm948_vm3 = vcmp.lt.s32.totalorder %v694_v50, 15 }
 0x12b   : > { %v497_v54 = vmax.f32 %v446_v48, 0.0 }
 0x12c   : > { %v1410_v60 = vpop.f32.mrf.mxu1 }
 0x12d   : > { %v1042_v0 = vsel %vm946_vm13, %v497_v54, 0.0  ;;  %v1686_v7 = vrot.slane %v497_v54, 1  ;;  %v3682_v10 = vpack.c.bf16 %v497_v54, %v496_v23  ;;  %v3713_v54 = vmax.f32 %v461_v18, 0.0 }
 0x12e   : > { %v3686_v13 = vrot.slane %v1042_v0, 7  ;;  %v1544_v4 = vpop.f32.mrf.mxu2 }
 0x12f   : > { %v3694_v29 = vadd.f32 %v1544_v4, %v1407_v28  ;;  %3139 = vmatmul.msk.bf16.gmra.mxu1 %vm1338_vm4, %v3682_v10  ;;  %v1687_v17 = vsel %vm1648_vm6, %v1684_v26, %v1686_v7  ;;  %v729_v28 = vand.u32 15, %v537_v9  ;;  %v1698_v62 = vrot.slane %v3713_v54, 1 }
 0x130   : > { %v448_v31 = vpop.f32.mrf.mxu0  ;;  %v1252_v41 = vsel %vm1213_vm5, %v1249_v59, %v3686_v13  ;;  %v3724_v9 = vrot.slane %v1175_v6, 1 }
 0x131   : > { %v449_v46 = vadd.f32 %v3456_v33, %v448_v31  ;;  %v3710_v48 = vpack.c.bf16 %v1252_v41, %v1250_v37  ;;  %vm1081_vm2 = vcmp.gt.s32.totalorder %v729_v28, 0  ;;  %v468_v37 = vpop.f32.mrf.mxu3  ;;  %v539_v41 = vadd.s32 224, %v3458_v34 }
 0x132   : > { %v1177_v58 = vsel %vm1081_vm2, %v3707_v42, 0.0  ;;  %v1699_v28 = vsel %vm1648_vm6, %v3724_v9, %v1698_v62 }
 0x133   : > { %4904 = vst [vmem:[#allocation12_spill] sm:$0xff] %v3710_v48  ;;  %v498_v26 = vmax.f32 %v449_v46, 0.0  ;;  %3154 = vmatmul.msk.bf16.gmra.mxu2 %vm1338_vm4, %v3710_v48  ;;  %3184 = vmatmul.msk.bf16.gmra.mxu0 %vm1338_vm4, %v3622_v2  ;;  %v1700_v20 = vrot.slane %v1177_v58, 1  ;;  %v469_v58 = vadd.f32 %v3456_v33, %v468_v37 }
 0x134   : > { %v1412_v59 = vpop.f32.mrf.mxu1 }
 0x135   : > { %v1171_v0 = vsel %vm1075_vm15, %v498_v26, 0.0  ;;  %v1701_v6 = vsel %vm1648_vm6, %v1698_v62, %v1700_v20  ;;  %v1253_v21 = vrot.slane %v498_v26, 7  ;;  %v3749_v62 = vmax.f32 %v469_v58, 0.0 }
 0x136   : > { %v1688_v4 = vrot.slane %v1171_v0, 1  ;;  %v1547_v18 = vpop.f32.mrf.mxu2  ;;  %v533_v0 = vadd.s32 176, %v3458_v34 }
 0x137   : > { %v3726_v30 = vadd.f32 %v1547_v18, %v1410_v60  ;;  %v3738_v18 = vpack.c.bf16 %v1701_v6, %v1699_v28 }
 0x138   : > { %v450_v31 = vpop.f32.mrf.mxu0  ;;  %v1689_v23 = vsel %vm1648_vm6, %v1686_v7, %v1688_v4  ;;  %v743_v7 = vand.u32 15, %v539_v41  ;;  %v701_v61 = vand.u32 15, %v533_v0 }
 0x139   : > { %v451_v46 = vadd.f32 %v3456_v33, %v450_v31  ;;  %v3734_v49 = vpack.c.bf16 %v1689_v23, %v1687_v17  ;;  %v466_v17 = vadd.f32 %v3456_v33, %v465_v45  ;;  %v470_v28 = vpop.f32.mrf.mxu3 }
 0x13a   : > { %vm1083_vm7 = vcmp.gt.s32.totalorder %v743_v7, 0  ;;  %vm1077_vm8 = vcmp.gt.s32.totalorder %v701_v61, 0 }
 0x13b   : > { %v499_v60 = vmax.f32 %v451_v46, 0.0  ;;  %v3759_v46 = vmax.f32 %v466_v17, 0.0 }
 0x13c   : > { %v1415_v63 = vpop.f32.mrf.mxu1 }
 0x13d   : > { %v1044_v40 = vsel %vm948_vm3, %v499_v60, 0.0  ;;  %v1690_v2 = vrot.slane %v499_v60, 1  ;;  %v3740_v27 = vpack.c.bf16 %v499_v60, %v498_v26  ;;  %v1254_v26 = vsel %vm1213_vm5, %v3686_v13, %v1253_v21 }
 0x13e   : > { %v3742_v31 = vrot.slane %v1044_v40, 7  ;;  %v1549_v50 = vpop.f32.mrf.mxu2  ;;  %v1179_v13 = vsel %vm1083_vm7, %v3749_v62, 0.0 }
 0x13f   : > { %v3745_v23 = vadd.f32 %v1549_v50, %v1412_v59  ;;  %3140 = vmatmul.msk.bf16.gmra.mxu1 %vm1338_vm4, %v3740_v27  ;;  %v1691_v37 = vsel %vm1648_vm6, %v1688_v4, %v1690_v2  ;;  %v1702_v4 = vrot.slane %v3759_v46, 1  ;;  %v1704_v61 = vrot.slane %v1179_v13, 1 }
 0x140   : > { %v453_v41 = vpop.f32.mrf.mxu0  ;;  %v1256_v40 = vsel %vm1213_vm5, %v1253_v21, %v3742_v31  ;;  %v541_v50 = vadd.s32 240, %v3458_v34 }
 0x141   : > { %v454_v45 = vadd.f32 %v3456_v33, %v453_v41  ;;  %v3757_v59 = vpack.c.bf16 %v1256_v40, %v1254_v26  ;;  %v473_v41 = vpop.f32.mrf.mxu3  ;;  %v1703_v40 = vsel %vm1648_vm6, %v1700_v20, %v1702_v4 }
 0x142   : > { %v757_v32 = vand.u32 15, %v541_v50  ;;  %v471_v50 = vadd.f32 %v3456_v33, %v470_v28 }
 0x143   : > { %4905 = vst [vmem:[#allocation13_spill] sm:$0xff] %v3757_v59  ;;  %v3761_v0 = vmax.f32 %v454_v45, 0.0  ;;  %3155 = vmatmul.msk.bf16.gmra.mxu2 %vm1338_vm4, %v3757_v59  ;;  %3185 = vmatmul.msk.bf16.gmra.mxu0 %vm1338_vm4, %v3642_v38  ;;  %v474_v38 = vadd.f32 %v3456_v33, %v473_v41 }
 0x144   : > { %v1417_v21 = vpop.f32.mrf.mxu1  ;;  %vm3792_vm9 = vcmp.gt.s32.totalorder %v757_v32, 0 }
 0x145   : > { %v1173_v6 = vsel %vm1077_vm8, %v3761_v0, 0.0  ;;  %v3789_v20 = vmax.f32 %v474_v38, 0.0 }
 0x146   : > { %v1692_v60 = vrot.slane %v1173_v6, 1  ;;  %v1552_v58 = vpop.f32.mrf.mxu2  ;;  %v1705_v6 = vsel %vm1648_vm6, %v1702_v4, %v1704_v61 }
 0x147   : > { %v3770_v7 = vadd.f32 %v1552_v58, %v1415_v63  ;;  %v3782_v63 = vpack.c.bf16 %v1705_v6, %v1703_v40 }
 0x148   : > { %v455_v17 = vpop.f32.mrf.mxu0  ;;  %v1693_v26 = vsel %vm1648_vm6, %v1690_v2, %v1692_v60 }
 0x149   : > { %v456_v45 = vadd.f32 %v3456_v33, %v455_v17  ;;  %v3777_v3 = vpack.c.bf16 %v1693_v26, %v1691_v37  ;;  %v475_v28 = vpop.f32.mrf.mxu3 }
 0x14a   : > { %v476_v40 = vadd.f32 %v3456_v33, %v475_v28 }
 0x14b   : > { %v3780_v13 = vmax.f32 %v456_v45, 0.0  ;;  %v3813_v45 = vmax.f32 %v471_v50, 0.0 }
 0x14c   : > { %v1420_v58 = vpop.f32.mrf.mxu1 }
 0x14d   : > { %v3786_v35 = vpack.c.bf16 %v3780_v13, %v3761_v0  ;;  %v1694_v2 = vrot.slane %v3780_v13, 1 }
 0x14e   : > { %v1554_v17 = vpop.f32.mrf.mxu2 }
 0x14f   : > { %v3796_v4 = vadd.f32 %v1554_v17, %v1417_v21  ;;  %3141 = vmatmul.msk.bf16.vlgmr.msrb.gmra.mxu3 %vm1338_vm4, %v3786_v35  ;;  %3195 = vmatmul.msk.bf16.vlgmr.msrb.gmra.mxu1 %vm1338_vm4, %v3473_v56  ;;  %v1695_v41 = vsel %vm1648_vm6, %v1692_v60, %v1694_v2  ;;  %v1697_v38 = vsel %vm1648_vm6, %v1694_v2, %v3724_v9  ;;  %v1181_v21 = vsel %vm3792_vm9, %v3789_v20, 0.0 }
 0x150   : > { %v3805_v26 = vpop.f32.mrf.mxu0  ;;  %v3807_v32 = vpack.c.bf16 %v1697_v38, %v1695_v41  ;;  %v3819_v56 = vmax.f32 %v476_v40, 0.0  ;;  %v1706_v60 = vrot.slane %v3813_v45, 1  ;;  %v3822_v6 = vrot.slane %v1181_v21, 1 }
 0x151   : > { %4908 = vst [vmem:[#allocation14_spill] sm:$0xff] %v3805_v26  ;;  %v3839_v21 = vpack.c.bf16 %v3713_v54, %v3684_v11 }
 0x152   : > { %v3826_v2 = vpack.c.bf16 %v3819_v56, %v3789_v20  ;;  %v1707_v37 = vsel %vm1648_vm6, %v1704_v61, %v1706_v60  ;;  %v1709_v41 = vsel %vm1648_vm6, %v1706_v60, %v3822_v6 }
 0x153   : > { %3186 = vmatmul.msk.bf16.gmra.mxu0 %vm1338_vm4, %v3666_v19  ;;  %3212 = vmatmul.msk.bf16.vlgmr.msrb.gmra.mxu2 %vm1338_vm4, %v3492_v12  ;;  %v3835_v38 = vpack.c.bf16 %v1709_v41, %v1707_v37  ;;  %v534_v37 = vadd.s32 184, %v3458_v34 }
 0x154   : > { %v1422_v9 = vpop.f32.mrf.mxu1 }
 0x156   : > { %v1557_v33 = vpop.f32.mrf.mxu2 }
 0x157   : > { %v3828_v17 = vadd.f32 %v1557_v33, %v1420_v58 }
 0x158   : > { %v3830_v50 = vpop.f32.mrf.mxu0 }
 0x159   : > { %4909 = vst [vmem:[#allocation15_spill] sm:$0xff] %v3828_v17 }
 0x15a   : > { %4910 = vst [vmem:[#allocation16_spill] sm:$0xff] %v3830_v50 }
 0x15c   : > { %v1425_v28 = vpop.f32.mrf.mxu1 }
 0x15e   : > { %v1559_v40 = vpop.f32.mrf.mxu2 }
 0x15f   : > { %v3841_v26 = vadd.f32 %v1559_v40, %v1422_v9  ;;  %3142 = vmatmul.msk.bf16.gmra.mxu3 %vm1338_vm4, %v3839_v21  ;;  %3196 = vmatmul.msk.bf16.gmra.mxu1 %vm1338_vm4, %v3498_v22  ;;  %v3860_v40 = vpack.c.bf16 %v3759_v46, %v3707_v42 }
 0x160   : > { %v3847_v61 = vpop.f32.mrf.mxu0 }
 0x161   : > { %4911 = vst [vmem:[#allocation17_spill] sm:$0xff] %v3841_v26 }
 0x162   : > { %4912 = vst [vmem:[#allocation18_spill] sm:$0xff] %v3847_v61 }
 0x163   : > { %3187 = vmatmul.msk.bf16.gmra.mxu0 %vm1338_vm4, %v3710_v48  ;;  %3213 = vmatmul.msk.bf16.gmra.mxu2 %vm1338_vm4, %v3521_v47 }
 0x164   : > { %v1427_v58 = vpop.f32.mrf.mxu1 }
 0x166   : > { %v1562_v60 = vpop.f32.mrf.mxu2 }
 0x167   : > { %v3853_v33 = vadd.f32 %v1562_v60, %v1425_v28  ;;  %v3160_v28 = vld [vmem:[%s4869_s3 + $0x4] sm:$0x3]  ;;  %v708_v60 = vand.u32 15, %v534_v37 }
 0x168   : > { %v3855_v9 = vpop.f32.mrf.mxu0  ;;  %v1809_v48 = vsel %vm1387_vm1, %v3160_v28, 0 }
 0x169   : > { %4913 = vst [vmem:[#allocation19_spill] sm:$0xff] %v3853_v33  ;;  %1818 = vmatpush.bf16.msrb.mxu3 %v1809_v48  ;;  %vm950_vm10 = vcmp.lt.s32.totalorder %v708_v60, 15  ;;  %v536_v48 = vadd.s32 200, %v3458_v34 }
 0x16a   : > { %4914 = vst [vmem:[#allocation20_spill] sm:$0xff] %v3855_v9  ;;  %v1046_v19 = vsel %vm950_vm10, %v3780_v13, 0.0 }
 0x16b   : > { %v1259_v37 = vrot.slane %v1046_v19, 7  ;;  %v722_v19 = vand.u32 15, %v536_v48 }
 0x16c   : > { %v1430_v41 = vpop.f32.mrf.mxu1 }
 0x16d   : > { %vm952_vm11 = vcmp.lt.s32.totalorder %v722_v19, 15 }
 0x16e   : > { %v1564_v61 = vpop.f32.mrf.mxu2 }
 0x16f   : > { %v3862_v50 = vadd.f32 %v1564_v61, %v1427_v58  ;;  %3143 = vmatmul.msk.bf16.gmra.mxu3 %vm1338_vm4, %v3860_v40  ;;  %3197 = vmatmul.msk.bf16.gmra.mxu1 %vm1338_vm4, %v3526_v57 }
 0x170   : > { %v3871_v9 = vpop.f32.mrf.mxu0 }
 0x171   : > { %4915 = vst [vmem:[#allocation21_spill] sm:$0xff] %v3862_v50 }
 0x172   : > { %4916 = vst [vmem:[#allocation22_spill] sm:$0xff] %v3871_v9  ;;  %v1257_v9 = vrot.slane %v3761_v0, 7 }
 0x173   : > { %3188 = vmatmul.msk.bf16.gmra.mxu0 %vm1338_vm4, %v3757_v59  ;;  %3214 = vmatmul.msk.bf16.gmra.mxu2 %vm1338_vm4, %v3545_v16  ;;  %v3887_v59 = vpack.c.bf16 %v3813_v45, %v3749_v62 }
 0x174   : > { %v1432_v61 = vpop.f32.mrf.mxu1  ;;  %v1260_v60 = vsel %vm1213_vm5, %v1257_v9, %v1259_v37  ;;  %v1258_v13 = vsel %vm1213_vm5, %v3742_v31, %v1257_v9  ;;  %v538_v9 = vadd.s32 216, %v3458_v34 }
 0x176   : > { %v1567_v58 = vpop.f32.mrf.mxu2 }
 0x177   : > { %v3879_v50 = vadd.f32 %v1567_v58, %v1430_v41  ;;  %v3900_v41 = vpack.c.bf16 %v1260_v60, %v1258_v13  ;;  %v1048_v58 = vsel %vm952_vm11, %v3713_v54, 0.0  ;;  %v736_v54 = vand.u32 15, %v538_v9 }
 0x178   : > { %v3881_v33 = vpop.f32.mrf.mxu0  ;;  %v1263_v31 = vrot.slane %v1048_v58, 7  ;;  %v1265_v9 = vrot.slane %v3707_v42, 7 }
 0x179   : > { %4917 = vst [vmem:[#allocation23_spill] sm:$0xff] %v3879_v50  ;;  %vm954_vm12 = vcmp.lt.s32.totalorder %v736_v54, 15 }
 0x17a   : > { %4918 = vst [vmem:[#allocation24_spill] sm:$0xff] %v3881_v33 }
 0x17b   : > { %4921 = vst [vmem:[#allocation27_spill] sm:$0xff] %v3900_v41 }
 0x17c   : > { %v1435_v28 = vpop.f32.mrf.mxu1 }
 0x17e   : > { %v1569_v26 = vpop.f32.mrf.mxu2 }
 0x17f   : > { %v3890_v17 = vadd.f32 %v1569_v26, %v1432_v61  ;;  %3144 = vmatmul.msk.bf16.gmra.mxu3 %vm1338_vm4, %v3887_v59  ;;  %3198 = vmatmul.msk.bf16.gmra.mxu1 %vm1338_vm4, %v3548_v24 }
 0x180   : > { %v3896_v0 = vpop.f32.mrf.mxu0 }
 0x181   : > { %4919 = vst [vmem:[#allocation25_spill] sm:$0xff] %v3890_v17 }
 0x182   : > { %4920 = vst [vmem:[#allocation26_spill] sm:$0xff] %v3896_v0  ;;  %v1261_v0 = vrot.slane %v3684_v11, 7 }
 0x183   : > { %3189 = vmatmul.msk.bf16.gmra.mxu0 %vm1338_vm4, %v3900_v41  ;;  %3215 = vmatmul.msk.bf16.gmra.mxu2 %vm1338_vm4, %v3565_v44 }
 0x184   : > { %v1437_v26 = vpop.f32.mrf.mxu1  ;;  %v1262_v17 = vsel %vm1213_vm5, %v1259_v37, %v1261_v0  ;;  %v1264_v50 = vsel %vm1213_vm5, %v1261_v0, %v1263_v31 }
 0x185   : > { %v3923_v11 = vpack.c.bf16 %v1264_v50, %v1262_v17  ;;  %v540_v17 = vadd.s32 232, %v3458_v34 }
 0x186   : > { %v1572_v61 = vpop.f32.mrf.mxu2 }
 0x187   : > { %v3907_v33 = vadd.f32 %v1572_v61, %v1435_v28  ;;  %4924 = vst [vmem:[#allocation30_spill] sm:$0xff] %v3923_v11 }
 0x188   : > { %v3909_v48 = vpop.f32.mrf.mxu0 }
 0x189   : > { %4922 = vst [vmem:[#allocation28_spill] sm:$0xff] %v3909_v48  ;;  %v1266_v48 = vsel %vm1213_vm5, %v1263_v31, %v1265_v9 }
 0x18c   : > { %v1440_v60 = vpop.f32.mrf.mxu1 }
 0x18e   : > { %v1574_v13 = vpop.f32.mrf.mxu2 }
 0x18f   : > { %v3915_v19 = vadd.f32 %v1574_v13, %v1437_v26  ;;  %3156 = vmatmul.msk.bf16.vlgmr.msra.gmra.mxu3 %vm1338_vm4, %v3900_v41  ;;  %3199 = vmatmul.msk.bf16.gmra.mxu1 %vm1338_vm4, %v3568_v51  ;;  %v1050_v26 = vsel %vm954_vm12, %v3759_v46, 0.0  ;;  %v750_v46 = vand.u32 15, %v540_v17 }
 0x190   : > { %v3921_v28 = vpop.f32.mrf.mxu0  ;;  %v1267_v13 = vrot.slane %v1050_v26, 7 }
 0x191   : > { %4923 = vst [vmem:[#allocation29_spill] sm:$0xff] %v3921_v28  ;;  %vm956_vm13 = vcmp.lt.s32.totalorder %v750_v46, 15  ;;  %v542_v46 = vadd.s32 248, %v3458_v34  ;;  %v3228_v34 = vld [vmem:[%s4869_s3 + $0xc] sm:$0x3] }
 0x192   : > { %v1268_v41 = vsel %vm1213_vm5, %v1265_v9, %v1267_v13  ;;  %v1269_v9 = vrot.slane %v3749_v62, 7  ;;  %v3245_v62 = vld [vmem:[%s4869_s3 + $0xe] sm:$0x3] }
 0x193   : > { %3190 = vmatmul.msk.bf16.gmra.mxu0 %vm1338_vm4, %v3923_v11  ;;  %3216 = vmatmul.msk.bf16.gmra.mxu2 %vm1338_vm4, %v3585_v8  ;;  %v3946_v42 = vpack.c.bf16 %v1268_v41, %v1266_v48 }
 0x194   : > { %v1442_v37 = vpop.f32.mrf.mxu1 }
 0x195   : > { %4928 = vst [vmem:[#allocation34_spill] sm:$0xff] %v3946_v42 }
 0x196   : > { %v1577_v0 = vpop.f32.mrf.mxu2 }
 0x197   : > { %v3930_v61 = vadd.f32 %v1577_v0, %v1440_v60  ;;  %v1052_v0 = vsel %vm956_vm13, %v3813_v45, 0.0  ;;  %v1270_v45 = vsel %vm1213_vm5, %v1267_v13, %v1269_v9  ;;  %v764_v13 = vand.u32 15, %v542_v46  ;;  %v3261_v46 = vld [vmem:[%s4869_s3 + $0x10] sm:$0x3] }
 0x198   : > { %v3932_v58 = vpop.f32.mrf.mxu0  ;;  %v1271_v17 = vrot.slane %v1052_v0, 7 }
 0x199   : > { %4925 = vst [vmem:[#allocation31_spill] sm:$0xff] %v3932_v58  ;;  %vm958_vm14 = vcmp.lt.s32.totalorder %v764_v13, 15 }
 0x19c   : > { %v1445_v50 = vpop.f32.mrf.mxu1 }
 0x19e   : > { %v1579_v28 = vpop.f32.mrf.mxu2 }
 0x19f   : > { %v3938_v54 = vadd.f32 %v1579_v28, %v1442_v37  ;;  %3157 = vmatmul.msk.bf16.gmra.mxu3 %vm1338_vm4, %v3923_v11  ;;  %3200 = vmatmul.msk.bf16.gmra.mxu1 %vm1338_vm4, %v3588_v15  ;;  %v2201_v28 = vrot.slane %v3819_v56, 1 }
 0x1a0   : > { %v3944_v60 = vpop.f32.mrf.mxu0 }
 0x1a1   : > { %4926 = vst [vmem:[#allocation32_spill] sm:$0xff] %v3938_v54  ;;  %v2202_v41 = vsel %vm1648_vm6, %v3822_v6, %v2201_v28  ;;  %v2205_v48 = vsel %vm1648_vm6, %v2201_v28, 0.0  ;;  %v2471_v6 = vsel %vm1387_vm1, %v3245_v62, 0  ;;  %v2345_v28 = vsel %vm1387_vm1, %v3228_v34, 0 }
 0x1a2   : > { %4927 = vst [vmem:[#allocation33_spill] sm:$0xff] %v3944_v60  ;;  %v3962_v58 = vpack.c.bf16 %v2205_v48, %v2202_v41  ;;  %2480 = vmatpush.bf16.msra.mxu0 %v2471_v6  ;;  %2354 = vmatpush.bf16.msra.mxu3 %v2345_v28  ;;  %v1054_v41 = vsel %vm958_vm14, %v3819_v56, 0.0 }
 0x1a3   : > { %3191 = vmatmul.msk.bf16.gmra.mxu0 %vm1338_vm4, %v3946_v42  ;;  %3217 = vmatmul.msk.bf16.gmra.mxu2 %vm1338_vm4, %v3607_v43  ;;  %v3997_v62 = vrot.slane %v1054_v41, 7 }
 0x1a4   : > { %v1447_v31 = vpop.f32.mrf.mxu1 }
 0x1a5   : > { %4932 = vst [vmem:[#allocation38_spill] sm:$0xff] %v3997_v62 }
 0x1a6   : > { %v1582_v37 = vpop.f32.mrf.mxu2 }
 0x1a7   : > { %v3954_v26 = vadd.f32 %v1582_v37, %v1445_v50  ;;  %v1272_v50 = vsel %vm1213_vm5, %v1269_v9, %v1271_v17 }
 0x1a8   : > { %v3960_v60 = vpop.f32.mrf.mxu0  ;;  %v3981_v0 = vpack.c.bf16 %v1272_v50, %v1270_v45  ;;  %v2597_v45 = vsel %vm1387_vm1, %v3261_v46, 0  ;;  %v1934_v50 = vrot.slane %v3789_v20, 7  ;;  %v1741_v46 = vsel %vm1648_vm6, 0.0, %v3471_v53 }
 0x1a9   : > { %4929 = vst [vmem:[#allocation35_spill] sm:$0xff] %v3960_v60  ;;  %2606 = vmatpush.bf16.msra.mxu1 %v2597_v45 }
 0x1aa   : > { %4930 = vst [vmem:[#allocation36_spill] sm:$0xff] %v3981_v0  ;;  %v1935_v13 = vsel %vm1213_vm5, %v1271_v17, %v1934_v50  ;;  %v1937_v56 = vsel %vm1213_vm5, %v1934_v50, %v3997_v62  ;;  %v3355_v50 = vmov 0.0  }
 0x1ab   : > { %v4010_v20 = vpack.c.bf16 %v1937_v56, %v1935_v13 }
 0x1ac   : > { %v1450_v11 = vpop.f32.mrf.mxu1 }
 0x1ad   : > { %4934 = vst [vmem:[#allocation40_spill] sm:$0xff] %v4010_v20 }
 0x1ae   : > { %v1584_v54 = vpop.f32.mrf.mxu2 }
 0x1af   : > { %v3970_v37 = vadd.f32 %v1584_v54, %v1447_v31  ;;  %3158 = vmatmul.msk.bf16.gmra.mxu3 %vm1338_vm4, %v3946_v42  ;;  %3201 = vmatmul.msk.bf16.gmra.mxu1 %vm1338_vm4, %v3610_v1 }
 0x1b0   : > { %v3987_v31 = vpop.f32.mrf.mxu0 }
 0x1b1   : > { %4931 = vst [vmem:[#allocation37_spill] sm:$0xff] %v3987_v31 }
 0x1b3   : > { %3192 = vmatmul.msk.bf16.gmra.mxu0 %vm1338_vm4, %v3981_v0  ;;  %3218 = vmatmul.msk.bf16.gmra.mxu2 %vm1338_vm4, %v3631_v14 }
 0x1b4   : > { %v1452_v54 = vpop.f32.mrf.mxu1 }
 0x1b6   : > { %v1587_v9 = vpop.f32.mrf.mxu2 }
 0x1b7   : > { %v3990_v48 = vadd.f32 %v1587_v9, %v1450_v11 }
 0x1b8   : > { %v4002_v11 = vpop.f32.mrf.mxu0 }
 0x1b9   : > { %4933 = vst [vmem:[#allocation39_spill] sm:$0xff] %v4002_v11 }
 0x1bc   : > { %v1455_v34 = vpop.f32.mrf.mxu1 }
 0x1be   : > { %v1589_v6 = vpop.f32.mrf.mxu2 }
 0x1bf   : > { %v4004_v28 = vadd.f32 %v1589_v6, %v1452_v54  ;;  %3159 = vmatmul.msk.bf16.gmra.mxu3 %vm1338_vm4, %v3981_v0  ;;  %3202 = vmatmul.msk.bf16.gmra.mxu1 %vm1338_vm4, %v3634_v25  ;;  %v1742_v6 = vpack.c.bf16 %v1741_v46, %v3355_v50 }
 0x1c0   : > { %v4018_v54 = vpop.f32.mrf.mxu0 }
 0x1c1   : > { %4935 = vst [vmem:[#allocation41_spill] sm:$0xff] %v4018_v54 }
 0x1c3   : > { %3193 = vmatmul.msk.bf16.gmra.mxu0 %vm1338_vm4, %v4010_v20  ;;  %3219 = vmatmul.msk.bf16.gmra.mxu2 %vm1338_vm4, %v3653_v55 }
 0x1c4   : > { %v1457_v17 = vpop.f32.mrf.mxu1 }
 0x1c6   : > { %v1592_v9 = vpop.f32.mrf.mxu2 }
 0x1c7   : > { %v4016_v41 = vadd.f32 %v1592_v9, %v1455_v34 }
 0x1c8   : > { %v4029_v34 = vpop.f32.mrf.mxu0 }
 0x1c9   : > { %4936 = vst [vmem:[#allocation42_spill] sm:$0xff] %v4029_v34 }
 0x1cc   : > { %v4022_v45 = vpop.f32.mrf.mxu1 }
 0x1ce   : > { %v1594_v13 = vpop.f32.mrf.mxu2 }
 0x1cf   : > { %v4024_v56 = vadd.f32 %v1594_v13, %v1457_v17  ;;  %3161 = vmatmul.msk.bf16.vlgmr.msrb.gmra.mxu3 %vm1338_vm4, %v1742_v6  ;;  %3203 = vmatmul.msk.bf16.gmra.mxu1 %vm1338_vm4, %v3658_v5 }
 0x1d0   : > { %v4039_v17 = vpop.f32.mrf.mxu0 }
 0x1d1   : > { %4937 = vst [vmem:[#allocation43_spill] sm:$0xff] %v4039_v17 }
 0x1d2   : > { %v1460_v62 = vpop.f32.mrf.mxu3 }
 0x1d3   : > { %3220 = vmatmul.msk.bf16.gmra.mxu2 %vm1338_vm4, %v3680_v52  ;;  %3246 = vmatmul.msk.bf16.vlgmr.msra.gmra.mxu0 %vm1338_vm4, %v3498_v22 }
 0x1d4   : > { %v4035_v53 = vpop.f32.mrf.mxu1 }
 0x1d6   : > { %v4071_v20 = vpop.f32.mrf.mxu2 }
 0x1d8   : > { %v4051_v6 = vpop.f32.mrf.mxu0 }
 0x1d9   : > { %4939 = vst [vmem:[#allocation45_spill] sm:$0xff] %v4051_v6 }
 0x1da   : > { %v1462_v9 = vpop.f32.mrf.mxu3 }
 0x1dc   : > { %v4037_v46 = vpop.f32.mrf.mxu1 }
 0x1de   : > { %v4085_v31 = vpop.f32.mrf.mxu2 }
 0x1df   : > { %3162 = vmatmul.msk.bf16.gmra.mxu3 %vm1338_vm4, %v3492_v12  ;;  %3204 = vmatmul.msk.bf16.gmra.mxu1 %vm1338_vm4, %v3682_v10 }
 0x1e0   : > { %v4059_v12 = vpop.f32.mrf.mxu0 }
 0x1e1   : > { %4941 = vst [vmem:[#allocation47_spill] sm:$0xff] %v4059_v12 }
 0x1e2   : > { %v1465_v50 = vpop.f32.mrf.mxu3 }
 0x1e3   : > { %3221 = vmatmul.msk.bf16.gmra.mxu2 %vm1338_vm4, %v3734_v49  ;;  %3247 = vmatmul.msk.bf16.gmra.mxu0 %vm1338_vm4, %v3526_v57 }
 0x1e4   : > { %v4049_v22 = vpop.f32.mrf.mxu1 }
 0x1e5   : > { %4938 = vst [vmem:[#allocation44_spill] sm:$0xff] %v4049_v22 }
 0x1e8   : > { %v4067_v54 = vpop.f32.mrf.mxu0 }
 0x1e9   : > { %4943 = vst [vmem:[#allocation49_spill] sm:$0xff] %v4067_v54 }
 0x1ea   : > { %v1467_v13 = vpop.f32.mrf.mxu3 }
 0x1ec   : > { %v4053_v34 = vpop.f32.mrf.mxu1 }
 0x1ed   : > { %4940 = vst [vmem:[#allocation46_spill] sm:$0xff] %v4053_v34 }
 0x1ef   : > { %3163 = vmatmul.msk.bf16.gmra.mxu3 %vm1338_vm4, %v3521_v47  ;;  %3205 = vmatmul.msk.bf16.gmra.mxu1 %vm1338_vm4, %v3740_v27 }
 0x1f0   : > { %v4083_v54 = vpop.f32.mrf.mxu0 }
 0x1f1   : > { %4946 = vst [vmem:[#allocation52_spill] sm:$0xff] %v4083_v54 }
 0x1f2   : > { %v1470_v17 = vpop.f32.mrf.mxu3 }
 0x1f3   : > { %3222 = vmatmul.msk.bf16.gmra.mxu2 %vm1338_vm4, %v3777_v3  ;;  %3248 = vmatmul.msk.bf16.gmra.mxu0 %vm1338_vm4, %v3548_v24 }
 0x1f4   : > { %v4065_v57 = vpop.f32.mrf.mxu1 }
 0x1f5   : > { %4942 = vst [vmem:[#allocation48_spill] sm:$0xff] %v4065_v57 }
 0x1f8   : > { %v4089_v42 = vpop.f32.mrf.mxu0 }
 0x1f9   : > { %4948 = vst [vmem:[#allocation54_spill] sm:$0xff] %v4089_v42 }
 0x1fa   : > { %v1472_v6 = vpop.f32.mrf.mxu3 }
 0x1fc   : > { %v4069_v11 = vpop.f32.mrf.mxu1 }
 0x1fd   : > { %4944 = vst [vmem:[#allocation50_spill] sm:$0xff] %v4069_v11  ;;  %v4095_v11 = vpop.f32.mrf.mxu2 }
 0x1ff   : > { %3164 = vmatmul.msk.bf16.gmra.mxu3 %vm1338_vm4, %v3545_v16  ;;  %3206 = vmatmul.msk.bf16.gmra.mxu1 %vm1338_vm4, %v3786_v35 }
 0x200   : > { %v4105_v42 = vpop.f32.mrf.mxu0 }
 0x201   : > { %4950 = vst [vmem:[#allocation56_spill] sm:$0xff] %v4105_v42 }
 0x202   : > { %v1475_v12 = vpop.f32.mrf.mxu3 }
 0x203   : > { %3223 = vmatmul.msk.bf16.gmra.mxu2 %vm1338_vm4, %v3807_v32  ;;  %3249 = vmatmul.msk.bf16.gmra.mxu0 %vm1338_vm4, %v3568_v51 }
 0x204   : > { %v4081_v24 = vpop.f32.mrf.mxu1 }
 0x205   : > { %4945 = vst [vmem:[#allocation51_spill] sm:$0xff] %v4081_v24  ;;  %v4107_v24 = vpop.f32.mrf.mxu2 }
 0x206   : > { %4951 = vst [vmem:[#allocation57_spill] sm:$0xff] %v4107_v24 }
 0x20a   : > { %v1477_v60 = vpop.f32.mrf.mxu3 }
 0x20c   : > { %v4087_v0 = vpop.f32.mrf.mxu1 }
 0x20d   : > { %4947 = vst [vmem:[#allocation53_spill] sm:$0xff] %v4087_v0 }
 0x20f   : > { %3165 = vmatmul.msk.bf16.gmra.mxu3 %vm1338_vm4, %v3565_v44  ;;  %3207 = vmatmul.msk.bf16.gmra.mxu1 %vm1338_vm4, %v3839_v21 }
 0x212   : > { %v1597_v51 = vpop.f32.mrf.mxu3 }
 0x213   : > { %v4097_v57 = vadd.f32 %v1597_v51, %v1460_v62  ;;  %3224 = vmatmul.msk.bf16.gmra.mxu2 %vm1338_vm4, %v3738_v18  ;;  %3250 = vmatmul.msk.bf16.gmra.mxu0 %vm1338_vm4, %v3588_v15  ;;  %v4117_v51 = vpop.f32.mrf.mxu0 }
 0x214   : > { %v4103_v54 = vpop.f32.mrf.mxu1  ;;  %4953 = vst [vmem:[#allocation59_spill] sm:$0xff] %v4117_v51 }
 0x215   : > { %4949 = vst [vmem:[#allocation55_spill] sm:$0xff] %v4103_v54 }
 0x21a   : > { %v1599_v0 = vpop.f32.mrf.mxu3 }
 0x21b   : > { %v4109_v34 = vadd.f32 %v1599_v0, %v1462_v9  ;;  %v4125_v0 = vpop.f32.mrf.mxu2  ;;  %v4131_v54 = vpop.f32.mrf.mxu0 }
 0x21c   : > { %v4111_v22 = vpop.f32.mrf.mxu1  ;;  %4955 = vst [vmem:[#allocation61_spill] sm:$0xff] %v4131_v54 }
 0x21d   : > { %4952 = vst [vmem:[#allocation58_spill] sm:$0xff] %v4111_v22 }
 0x21f   : > { %3166 = vmatmul.msk.bf16.gmra.mxu3 %vm1338_vm4, %v3585_v8  ;;  %3208 = vmatmul.msk.bf16.gmra.mxu1 %vm1338_vm4, %v3860_v40 }
 0x222   : > { %v1602_v62 = vpop.f32.mrf.mxu3 }
 0x223   : > { %v4119_v15 = vadd.f32 %v1602_v62, %v1465_v50  ;;  %3225 = vmatmul.msk.bf16.gmra.mxu2 %vm1338_vm4, %v3782_v63  ;;  %3251 = vmatmul.msk.bf16.gmra.mxu0 %vm1338_vm4, %v3610_v1  ;;  %v4133_v24 = vpop.f32.mrf.mxu2 }
 0x224   : > { %v4127_v9 = vpop.f32.mrf.mxu1 }
 0x225   : > { %4954 = vst [vmem:[#allocation60_spill] sm:$0xff] %v4127_v9 }
 0x22a   : > { %v1604_v42 = vpop.f32.mrf.mxu3 }
 0x22b   : > { %v4129_v22 = vadd.f32 %v1604_v42, %v1467_v13  ;;  %v4147_v42 = vpop.f32.mrf.mxu0  ;;  %v4149_v13 = vpop.f32.mrf.mxu2 }
 0x22c   : > { %v4139_v50 = vpop.f32.mrf.mxu1  ;;  %4957 = vst [vmem:[#allocation63_spill] sm:$0xff] %v4147_v42 }
 0x22d   : > { %4956 = vst [vmem:[#allocation62_spill] sm:$0xff] %v4139_v50 }
 0x22f   : > { %3167 = vmatmul.msk.bf16.gmra.mxu3 %vm1338_vm4, %v3607_v43  ;;  %3209 = vmatmul.msk.bf16.gmra.mxu1 %vm1338_vm4, %v3887_v59 }
 0x232   : > { %v1607_v1 = vpop.f32.mrf.mxu3 }
 0x233   : > { %v4141_v62 = vadd.f32 %v1607_v1, %v1470_v17  ;;  %3226 = vmatmul.msk.bf16.gmra.mxu2 %vm1338_vm4, %v3835_v38  ;;  %3252 = vmatmul.msk.bf16.gmra.mxu0 %vm1338_vm4, %v3634_v25  ;;  %v4159_v17 = vpop.f32.mrf.mxu0  ;;  %v4161_v50 = vpop.f32.mrf.mxu2 }
 0x234   : > { %v4151_v51 = vpop.f32.mrf.mxu1  ;;  %4959 = vst [vmem:[#allocation65_spill] sm:$0xff] %v4159_v17 }
 0x235   : > { %4958 = vst [vmem:[#allocation64_spill] sm:$0xff] %v4151_v51 }
 0x23a   : > { %v1609_v54 = vpop.f32.mrf.mxu3 }
 0x23b   : > { %v4153_v9 = vadd.f32 %v1609_v54, %v1472_v6  ;;  %v2804_v6 = vld [vmem:[%s4871_s5] sm:$0x3]  ;;  %v4175_v51 = vpop.f32.mrf.mxu0 }
 0x23c   : > { %v4169_v54 = vpop.f32.mrf.mxu1  ;;  %v2858_v42 = vsel %vm1387_vm1, %v2804_v6, 0  ;;  %4961 = vst [vmem:[#allocation67_spill] sm:$0xff] %v4175_v51 }
 0x23d   : > { %4960 = vst [vmem:[#allocation66_spill] sm:$0xff] %v4169_v54  ;;  %2867 = vmatpush.bf16.msra.mxu2 %v2858_v42 }
 0x23f   : > { %3168 = vmatmul.msk.bf16.gmra.mxu3 %vm1338_vm4, %v3631_v14  ;;  %3210 = vmatmul.msk.bf16.gmra.mxu1 %vm1338_vm4, %v3826_v2 }
 0x242   : > { %v1612_v1 = vpop.f32.mrf.mxu3 }
 0x243   : > { %v4163_v25 = vadd.f32 %v1612_v1, %v1475_v12  ;;  %3227 = vmatmul.msk.bf16.gmra.mxu2 %vm1338_vm4, %v3962_v58  ;;  %3253 = vmatmul.msk.bf16.gmra.mxu0 %vm1338_vm4, %v3658_v5  ;;  %v4190_v42 = vpop.f32.mrf.mxu0 }
 0x244   : > { %v4179_v1 = vpop.f32.mrf.mxu1  ;;  %4963 = vst [vmem:[#allocation69_spill] sm:$0xff] %v4190_v42 }
 0x245   : > { %4962 = vst [vmem:[#allocation68_spill] sm:$0xff] %v4179_v1 }
 0x24a   : > { %v1614_v17 = vpop.f32.mrf.mxu3 }
 0x24b   : > { %v4177_v12 = vadd.f32 %v1614_v17, %v1477_v60  ;;  %v4196_v17 = vpop.f32.mrf.mxu0 }
 0x24c   : > { %v4192_v6 = vpop.f32.mrf.mxu1  ;;  %4965 = vst [vmem:[#allocation71_spill] sm:$0xff] %v4196_v17 }
 0x24d   : > { %4964 = vst [vmem:[#allocation70_spill] sm:$0xff] %v4192_v6 }
 0x24f   : > { %3169 = vmatmul.msk.bf16.gmra.mxu3 %vm1338_vm4, %v3653_v55  ;;  %3262 = vmatmul.msk.bf16.vlgmr.msra.gmra.mxu1 %vm1338_vm4, %v3521_v47 }
 0x252   : > { %v1820_v5 = vpop.f32.mrf.mxu3 }
 0x253   : > { %v4186_v54 = vadd.f32 %v1820_v5, %v3603_v39  ;;  %3254 = vmatmul.msk.bf16.gmra.mxu0 %vm1338_vm4, %v3682_v10  ;;  %v4209_v10 = vpop.f32.mrf.mxu0 }
 0x254   : > { %v4202_v39 = vpop.f32.mrf.mxu1  ;;  %4967 = vst [vmem:[#allocation73_spill] sm:$0xff] %v4209_v10 }
 0x255   : > { %4966 = vst [vmem:[#allocation72_spill] sm:$0xff] %v4202_v39 }
 0x25a   : > { %v4194_v60 = vpop.f32.mrf.mxu3 }
 0x25c   : > { %v4214_v51 = vpop.f32.mrf.mxu1 }
 0x25d   : > { %4968 = vst [vmem:[#allocation74_spill] sm:$0xff] %v4214_v51 }
 0x25f   : > { %3170 = vmatmul.msk.bf16.gmra.mxu3 %vm1338_vm4, %v3680_v52  ;;  %3263 = vmatmul.msk.bf16.gmra.mxu1 %vm1338_vm4, %v3545_v16 }
 0x262   : > { %v1825_v47 = vpop.f32.mrf.mxu3 }
 0x263   : > { %v4205_v5 = vadd.f32 %v1825_v47, %v3673_v36  ;;  %3255 = vmatmul.msk.bf16.gmra.mxu0 %vm1338_vm4, %v3740_v27  ;;  %v4220_v36 = vpop.f32.mrf.mxu0 }
 0x264   : > { %4969 = vst [vmem:[#allocation75_spill] sm:$0xff] %v4220_v36  ;;  %v4227_v27 = vpop.f32.mrf.mxu1 }
 0x265   : > { %4970 = vst [vmem:[#allocation76_spill] sm:$0xff] %v4227_v27 }
 0x26a   : > { %v1827_v42 = vpop.f32.mrf.mxu3 }
 0x26b   : > { %v4212_v17 = vadd.f32 %v1827_v42, %v3694_v29  ;;  %v4232_v10 = vpop.f32.mrf.mxu0 }
 0x26f   : > { %3171 = vmatmul.msk.bf16.gmra.mxu3 %vm1338_vm4, %v3734_v49  ;;  %3264 = vmatmul.msk.bf16.gmra.mxu1 %vm1338_vm4, %v3565_v44  ;;  %v4238_v44 = vpop.f32.mrf.mxu1 }
 0x270   : > { %4971 = vst [vmem:[#allocation77_spill] sm:$0xff] %v4238_v44 }
 0x272   : > { %v1830_v16 = vpop.f32.mrf.mxu3 }
 0x273   : > { %v4223_v47 = vadd.f32 %v1830_v16, %v3726_v30  ;;  %3256 = vmatmul.msk.bf16.gmra.mxu0 %vm1338_vm4, %v3786_v35  ;;  %v4245_v35 = vpop.f32.mrf.mxu0 }
 0x27a   : > { %v1832_v29 = vpop.f32.mrf.mxu3 }
 0x27b   : > { %v4230_v42 = vadd.f32 %v1832_v29, %v3745_v23  ;;  %v4247_v29 = vpop.f32.mrf.mxu1 }
 0x27c   : > { %4972 = vst [vmem:[#allocation78_spill] sm:$0xff] %v4247_v29 }
 0x27f   : > { %3172 = vmatmul.msk.bf16.gmra.mxu3 %vm1338_vm4, %v3777_v3  ;;  %3265 = vmatmul.msk.bf16.gmra.mxu1 %vm1338_vm4, %v3585_v8  ;;  %v4256_v8 = vpop.f32.mrf.mxu0 }
 0x282   : > { %v1835_v30 = vpop.f32.mrf.mxu3 }
 0x283   : > { %v4241_v16 = vadd.f32 %v1835_v30, %v3770_v7  ;;  %3257 = vmatmul.msk.bf16.gmra.mxu0 %vm1338_vm4, %v3839_v21  ;;  %v4973_v30 = vld [vmem:[#allocation15_spill] sm:$0xff]  ;;  %v4263_v21 = vpop.f32.mrf.mxu1 }
 0x284   : > { %4974 = vst [vmem:[#allocation15_spill] sm:$0xff] %v4263_v21 }
 0x28a   : > { %v1837_v23 = vpop.f32.mrf.mxu3 }
 0x28b   : > { %v4250_v36 = vadd.f32 %v1837_v23, %v3796_v4  ;;  %v4265_v4 = vpop.f32.mrf.mxu0  ;;  %v4975_v23 = vld [vmem:[#allocation17_spill] sm:$0xff]  ;;  %v4270_v51 = vpop.f32.mrf.mxu1 }
 0x28c   : > { %4976 = vst [vmem:[#allocation17_spill] sm:$0xff] %v4270_v51 }
 0x28f   : > { %3173 = vmatmul.msk.bf16.gmra.mxu3 %vm1338_vm4, %v3807_v32  ;;  %3266 = vmatmul.msk.bf16.gmra.mxu1 %vm1338_vm4, %v3607_v43 }
 0x292   : > { %v1840_v7 = vpop.f32.mrf.mxu3 }
 0x293   : > { %v4259_v44 = vadd.f32 %v1840_v7, %v4973_v30  ;;  %3258 = vmatmul.msk.bf16.gmra.mxu0 %vm1338_vm4, %v3860_v40  ;;  %v4977_v7 = vld [vmem:[#allocation19_spill] sm:$0xff]  ;;  %v4281_v40 = vpop.f32.mrf.mxu0  ;;  %v4283_v21 = vpop.f32.mrf.mxu1 }
 0x294   : > { %4978 = vst [vmem:[#allocation19_spill] sm:$0xff] %v4283_v21 }
 0x29a   : > { %v1842_v29 = vpop.f32.mrf.mxu3 }
 0x29b   : > { %v4268_v27 = vadd.f32 %v1842_v29, %v4975_v23  ;;  %v4979_v23 = vld [vmem:[#allocation21_spill] sm:$0xff]  ;;  %v4288_v39 = vpop.f32.mrf.mxu0 }
 0x29f   : > { %3174 = vmatmul.msk.bf16.gmra.mxu3 %vm1338_vm4, %v3738_v18  ;;  %3267 = vmatmul.msk.bf16.gmra.mxu1 %vm1338_vm4, %v3631_v14 }
 0x2a2   : > { %v1845_v43 = vpop.f32.mrf.mxu3 }
 0x2a3   : > { %v4277_v30 = vadd.f32 %v1845_v43, %v4977_v7  ;;  %3259 = vmatmul.msk.bf16.gmra.mxu0 %vm1338_vm4, %v3887_v59  ;;  %v4294_v43 = vpop.f32.mrf.mxu1  ;;  %v4981_v59 = vld [vmem:[#allocation23_spill] sm:$0xff]  ;;  %v4301_v21 = vpop.f32.mrf.mxu0 }
 0x2a4   : > { %4980 = vst [vmem:[#allocation21_spill] sm:$0xff] %v4294_v43 }
 0x2aa   : > { %v1847_v29 = vpop.f32.mrf.mxu3 }
 0x2ab   : > { %v4286_v51 = vadd.f32 %v1847_v29, %v4979_v23  ;;  %v4983_v23 = vld [vmem:[#allocation25_spill] sm:$0xff]  ;;  %v4306_v1 = vpop.f32.mrf.mxu1 }
 0x2ac   : > { %4985 = vst [vmem:[#allocation79_spill] sm:$0xff] %v4306_v1  ;;  %v4989_v1 = vld [vmem:[#allocation2_spill] sm:$0xff] }
 0x2af   : > { %3175 = vmatmul.msk.bf16.gmra.mxu3 %vm1338_vm4, %v3782_v63  ;;  %3268 = vmatmul.msk.bf16.gmra.mxu1 %vm1338_vm4, %v3653_v55 }
 0x2b2   : > { %v1850_v14 = vpop.f32.mrf.mxu3 }
 0x2b3   : > { %v4297_v7 = vadd.f32 %v1850_v14, %v4981_v59  ;;  %3260 = vmatmul.msk.bf16.gmra.mxu0 %vm1338_vm4, %v3826_v2  ;;  %v4312_v14 = vpop.f32.mrf.mxu0  ;;  %v4987_v2 = vmov 0.0|0.0   ;;  %v4318_v43 = vpop.f32.mrf.mxu1 }
 0x2b4   : > { %4988 = vst [vmem:[#allocation81_spill] sm:$0xff] %v4318_v43  ;;  %v4992_v43 = vld [vmem:[#allocation32_spill] sm:$0xff] }
 0x2b5   : > { %4982 = vst [vmem:[#allocation23_spill] sm:$0xff] %v4297_v7 }
 0x2ba   : > { %v1852_v29 = vpop.f32.mrf.mxu3 }
 0x2bb   : > { %v4304_v6 = vadd.f32 %v1852_v29, %v4983_v23 }
 0x2bd   : > { %4984 = vst [vmem:[#allocation25_spill] sm:$0xff] %v4304_v6 }
 0x2bf   : > { %3176 = vmatmul.msk.bf16.gmra.mxu3 %vm1338_vm4, %v3835_v38  ;;  %3269 = vmatmul.msk.bf16.gmra.mxu1 %vm1338_vm4, %v3680_v52  ;;  %v4327_v52 = vpop.f32.mrf.mxu1 }
 0x2c0   : > { %4990 = vst [vmem:[#allocation2_spill] sm:$0xff] %v4327_v52 }
 0x2c2   : > { %v1855_v55 = vpop.f32.mrf.mxu3 }
 0x2c3   : > { %v4315_v59 = vadd.f32 %v1855_v55, %v3907_v33  ;;  %2556 = vmatmul.bf16.gmra.mxu0 %v4987_v2 }
 0x2c5   : > { %4986 = vst [vmem:[#allocation80_spill] sm:$0xff] %v4315_v59 }
 0x2c7   : > { %v4332_v59 = vpop.f32.mrf.mxu1 }
 0x2c8   : > { %4991 = vst [vmem:[#allocation82_spill] sm:$0xff] %v4332_v59 }
 0x2ca   : > { %v1857_v29 = vpop.f32.mrf.mxu3 }
 0x2cb   : > { %v4321_v23 = vadd.f32 %v1857_v29, %v3915_v19  ;;  %v4993_v19 = vld [vmem:[#allocation3_spill] sm:$0xff] }
 0x2cf   : > { %3229 = vmatmul.msk.bf16.vlgmr.msra.gmra.mxu3 %vm1338_vm4, %v4989_v1  ;;  %3270 = vmatmul.msk.bf16.gmra.mxu1 %vm1338_vm4, %v3734_v49  ;;  %v4344_v29 = vpop.f32.mrf.mxu1 }
 0x2d0   : > { %4995 = vst [vmem:[#allocation3_spill] sm:$0xff] %v4344_v29  ;;  %v5004_v29 = vld [vmem:[#allocation6_spill] sm:$0xff] }
 0x2d2   : > { %v1860_v6 = vpop.f32.mrf.mxu3 }
 0x2d3   : > { %v4330_v33 = vadd.f32 %v1860_v6, %v3930_v61 }
 0x2d7   : > { %v4349_v59 = vpop.f32.mrf.mxu1 }
 0x2d8   : > { %4997 = vst [vmem:[#allocation84_spill] sm:$0xff] %v4349_v59 }
 0x2da   : > { %v1862_v55 = vpop.f32.mrf.mxu3 }
 0x2db   : > { %v4335_v7 = vadd.f32 %v1862_v55, %v4992_v43  ;;  %v4998_v43 = vld [vmem:[#allocation4_spill] sm:$0xff] }
 0x2df   : > { %3230 = vmatmul.msk.bf16.gmra.mxu3 %vm1338_vm4, %v4993_v19  ;;  %3271 = vmatmul.msk.bf16.gmra.mxu1 %vm1338_vm4, %v3777_v3 }
 0x2e2   : > { %v1865_v1 = vpop.f32.mrf.mxu3 }
 0x2e3   : > { %v4342_v49 = vadd.f32 %v1865_v1, %v3954_v26  ;;  %v4358_v26 = vpop.f32.mrf.mxu1 }
 0x2e5   : > { %4994 = vst [vmem:[#allocation32_spill] sm:$0xff] %v4342_v49  ;;  %v5018_v49 = vld [vmem:[#allocation12_spill] sm:$0xff] }
 0x2ea   : > { %v1867_v61 = vpop.f32.mrf.mxu3 }
 0x2eb   : > { %v4347_v6 = vadd.f32 %v1867_v61, %v3970_v37  ;;  %v4363_v37 = vpop.f32.mrf.mxu2  ;;  %v5001_v61 = vld [vmem:[#allocation5_spill] sm:$0xff] }
 0x2ed   : > { %4996 = vst [vmem:[#allocation83_spill] sm:$0xff] %v4347_v6 }
 0x2ef   : > { %3231 = vmatmul.msk.bf16.gmra.mxu3 %vm1338_vm4, %v4998_v43  ;;  %3272 = vmatmul.msk.bf16.gmra.mxu1 %vm1338_vm4, %v3807_v32  ;;  %v4369_v32 = vpop.f32.mrf.mxu1 }
 0x2f2   : > { %v1870_v55 = vpop.f32.mrf.mxu3 }
 0x2f3   : > { %v4356_v3 = vadd.f32 %v1870_v55, %v3990_v48  ;;  %v4374_v55 = vpop.f32.mrf.mxu2 }
 0x2f5   : > { %4999 = vst [vmem:[#allocation4_spill] sm:$0xff] %v4356_v3  ;;  %v5016_v3 = vld [vmem:[#allocation9_spill] sm:$0xff] }
 0x2fa   : > { %v1872_v19 = vpop.f32.mrf.mxu3 }
 0x2fb   : > { %v4361_v1 = vadd.f32 %v1872_v19, %v4004_v28  ;;  %v4379_v19 = vpop.f32.mrf.mxu1 }
 0x2fd   : > { %5000 = vst [vmem:[#allocation85_spill] sm:$0xff] %v4361_v1 }
 0x2ff   : > { %3232 = vmatmul.msk.bf16.gmra.mxu3 %vm1338_vm4, %v5001_v61  ;;  %3273 = vmatmul.msk.bf16.gmra.mxu1 %vm1338_vm4, %v3738_v18  ;;  %v4385_v18 = vpop.f32.mrf.mxu2 }
 0x302   : > { %v1875_v43 = vpop.f32.mrf.mxu3 }
 0x303   : > { %v4372_v48 = vadd.f32 %v1875_v43, %v4016_v41  ;;  %v4390_v43 = vpop.f32.mrf.mxu1 }
 0x305   : > { %5002 = vst [vmem:[#allocation5_spill] sm:$0xff] %v4372_v48 }
 0x307   : > { %v4392_v52 = vpop.f32.mrf.mxu2 }
 0x30a   : > { %v1877_v59 = vpop.f32.mrf.mxu3 }
 0x30b   : > { %v4377_v28 = vadd.f32 %v1877_v59, %v4024_v56 }
 0x30d   : > { %5003 = vst [vmem:[#allocation86_spill] sm:$0xff] %v4377_v28  ;;  %v5007_v28 = vld [vmem:[#allocation7_spill] sm:$0xff] }
 0x30f   : > { %3233 = vmatmul.msk.bf16.gmra.mxu3 %vm1338_vm4, %v5004_v29  ;;  %3274 = vmatmul.msk.bf16.gmra.mxu1 %vm1338_vm4, %v3782_v63  ;;  %v4401_v63 = vpop.f32.mrf.mxu1 }
 0x312   : > { %v1880_v61 = vpop.f32.mrf.mxu3 }
 0x313   : > { %v4388_v41 = vadd.f32 %v1880_v61, %v4097_v57  ;;  %v4406_v61 = vpop.f32.mrf.mxu2 }
 0x315   : > { %5005 = vst [vmem:[#allocation6_spill] sm:$0xff] %v4388_v41 }
 0x317   : > { %v4408_v48 = vpop.f32.mrf.mxu1 }
 0x31a   : > { %v1882_v56 = vpop.f32.mrf.mxu3 }
 0x31b   : > { %v4395_v59 = vadd.f32 %v1882_v56, %v4109_v34  ;;  %v4413_v56 = vpop.f32.mrf.mxu2 }
 0x31d   : > { %5006 = vst [vmem:[#allocation87_spill] sm:$0xff] %v4395_v59 }
 0x31f   : > { %3234 = vmatmul.msk.bf16.gmra.mxu3 %vm1338_vm4, %v5007_v28  ;;  %3275 = vmatmul.msk.bf16.gmra.mxu1 %vm1338_vm4, %v3835_v38  ;;  %v5010_v28 = vld [vmem:[#allocation8_spill] sm:$0xff] }
 0x322   : > { %v1885_v29 = vpop.f32.mrf.mxu3 }
 0x323   : > { %v4404_v57 = vadd.f32 %v1885_v29, %v4119_v15  ;;  %v4422_v29 = vpop.f32.mrf.mxu1 }
 0x325   : > { %5008 = vst [vmem:[#allocation7_spill] sm:$0xff] %v4404_v57  ;;  %v4424_v57 = vpop.f32.mrf.mxu2 }
 0x32a   : > { %v1887_v41 = vpop.f32.mrf.mxu3 }
 0x32b   : > { %v4411_v34 = vadd.f32 %v1887_v41, %v4129_v22  ;;  %v4429_v41 = vpop.f32.mrf.mxu1 }
 0x32d   : > { %5009 = vst [vmem:[#allocation88_spill] sm:$0xff] %v4411_v34  ;;  %v5013_v34 = vld [vmem:[#allocation11_spill] sm:$0xff] }
 0x32f   : > { %3235 = vmatmul.msk.bf16.gmra.mxu3 %vm1338_vm4, %v5010_v28  ;;  %3276 = vmatmul.msk.bf16.gmra.mxu1 %vm1338_vm4, %v3962_v58  ;;  %v4434_v58 = vpop.f32.mrf.mxu2 }
 0x332   : > { %v1890_v38 = vpop.f32.mrf.mxu3 }
 0x333   : > { %v4420_v15 = vadd.f32 %v1890_v38, %v4141_v62  ;;  %v5015_v38 = vld [vmem:[#allocation14_spill] sm:$0xff] }
 0x335   : > { %5011 = vst [vmem:[#allocation8_spill] sm:$0xff] %v4420_v15  ;;  %v2038_v15 = vadd.f32 %v5015_v38, %v4186_v54 }
 0x337   : > { %v4446_v6 = vpop.f32.mrf.mxu2 }
 0x33a   : > { %v1892_v59 = vpop.f32.mrf.mxu3 }
 0x33b   : > { %v4427_v22 = vadd.f32 %v1892_v59, %v4153_v9  ;;  %v5017_v9 = vld [vmem:[#allocation10_spill] sm:$0xff] }
 0x33c   : > { %v1540_v59 = vadd.f32 %v5017_v9, %v5016_v3 }
 0x33d   : > { %5012 = vst [vmem:[#allocation89_spill] sm:$0xff] %v4427_v22 }
 0x33f   : > { %3236 = vmatmul.msk.bf16.gmra.mxu3 %vm1338_vm4, %v5013_v34  ;;  %2682 = vmatmul.bf16.gmra.mxu1 %v4987_v2  ;;  %v1901_v2 = vadd.f32 %v4194_v60, %v1540_v59  ;;  %v2168_v34 = vadd.f32 %v4022_v45, %v2038_v15  ;;  %v4455_v9 = vpop.f32.mrf.mxu2 }
 0x341   : > { %v2304_v54 = vadd.f32 %v4071_v20, %v2168_v34  ;;  %v4465_v20 = vld [vmem:[%s4870_s4] ss:$0 sm:$0xff] }
 0x342   : > { %v1895_v28 = vpop.f32.mrf.mxu3 }
 0x343   : > { %v4437_v62 = vadd.f32 %v1895_v28, %v4163_v25  ;;  %v5019_v25 = vld [vmem:[#allocation16_spill] sm:$0xff] }
 0x344   : > { %v2039_v28 = vadd.f32 %v5019_v25, %v1901_v2 }
 0x345   : > { %5014 = vst [vmem:[#allocation11_spill] sm:$0xff] %v4437_v62 }
 0x346   : > { %v2169_v3 = vadd.f32 %v4035_v53, %v2039_v28 }
 0x348   : > { %v2305_v45 = vadd.f32 %v4085_v31, %v2169_v3  ;;  %v4473_v31 = vpop.f32.mrf.mxu2 }
 0x34a   : > { %v1897_v1 = vpop.f32.mrf.mxu3 }
 0x34b   : > { %v4444_v22 = vadd.f32 %v1897_v1, %v4177_v12  ;;  %v5020_v1 = vld [vmem:[#allocation18_spill] sm:$0xff] }
 0x34c   : > { %v2040_v60 = vadd.f32 %v5020_v1, %v4205_v5  ;;  %v5021_v5 = vld [vmem:[#allocation13_spill] sm:$0xff] }
 0x34e   : > { %v2170_v2 = vadd.f32 %v4037_v46, %v2040_v60 }
 0x34f   : > { %3237 = vmatmul.msk.bf16.gmra.mxu3 %vm1338_vm4, %v5018_v49 }
 0x350   : > { %v2306_v28 = vadd.f32 %v4095_v11, %v2170_v2 }
 0x352   : > { %v2356_v38 = vpop.f32.mrf.mxu3 }
 0x353   : > { %v2436_v62 = vadd.f32 %v2356_v38, %v2304_v54 }
 0x355   : > { %v2562_v12 = vadd.f32 %v4232_v10, %v2436_v62 }
 0x357   : > { %v2688_v49 = vadd.f32 %v4358_v26, %v2562_v12  ;;  %v5022_v26 = vld [vmem:[#allocation20_spill] sm:$0xff] }
 0x358   : > { %v2041_v34 = vadd.f32 %v5022_v26, %v4212_v17  ;;  %v5023_v12 = vld [vmem:[#allocation44_spill] sm:$0xff] }
 0x359   : > { %v2724_v10 = vadd.f32 %v4465_v20, %v2688_v49  ;;  %v5025_v49 = vld [vmem:[#allocation57_spill] sm:$0xff] }
 0x35a   : > { %v2358_v15 = vpop.f32.mrf.mxu3  ;;  %v2171_v1 = vadd.f32 %v5023_v12, %v2041_v34 }
 0x35b   : > { %v2437_v59 = vadd.f32 %v2358_v15, %v2305_v45  ;;  %v5024_v45 = vld [vmem:[#allocation22_spill] sm:$0xff]  ;;  %v4486_v15 = vpop.f32.mrf.mxu1 }
 0x35c   : > { %v2042_v17 = vadd.f32 %v5024_v45, %v4223_v47  ;;  %v2307_v11 = vadd.f32 %v5025_v49, %v2171_v1  ;;  %v5028_v47 = vld [vmem:[#allocation24_spill] sm:$0xff] }
 0x35d   : > { %v2563_v53 = vadd.f32 %v4245_v35, %v2437_v59  ;;  %v2756_v35 = vmax.f32 %v2724_v10, 0.0  ;;  %v4489_v59 = vpop.f32.mrf.mxu2 }
 0x35f   : > { %v2689_v62 = vadd.f32 %v4369_v32, %v2563_v53  ;;  %3238 = vmatmul.msk.bf16.gmra.mxu3 %vm1338_vm4, %v5021_v5  ;;  %v4480_v32 = vpop.f32.mrf.mxu0  ;;  %v5026_v5 = vld [vmem:[#allocation46_spill] sm:$0xff] }
 0x360   : > { %v2172_v26 = vadd.f32 %v5026_v5, %v2042_v17 }
 0x361   : > { %v2725_v25 = vadd.f32 %v4465_v20, %v2689_v62 }
 0x362   : > { %v2361_v54 = vpop.f32.mrf.mxu3 }
 0x363   : > { %v2757_v38 = vmax.f32 %v2725_v25, 0.0  ;;  %v2438_v46 = vadd.f32 %v2361_v54, %v2306_v28  ;;  %v5027_v25 = vld [vmem:[#allocation27_spill] sm:$0xff]  ;;  %v2043_v28 = vadd.f32 %v5028_v47, %v4230_v42  ;;  %v5030_v42 = vld [vmem:[#allocation26_spill] sm:$0xff] }
 0x364   : > { %v2044_v49 = vadd.f32 %v5030_v42, %v4241_v16 }
 0x365   : > { %v2788_v3 = vpack.c.bf16 %v2757_v38, %v2756_v35  ;;  %v2564_v60 = vadd.f32 %v4256_v8, %v2438_v46  ;;  %v4506_v1 = vpop.f32.mrf.mxu2 }
 0x367   : > { %3277 = vmatmul.msk.bf16.vlgmr.msra.gmra.mxu2 %vm1338_vm4, %v2788_v3  ;;  %v2690_v2 = vadd.f32 %v4379_v19, %v2564_v60  ;;  %v4500_v54 = vpop.f32.mrf.mxu0  ;;  %v2308_v19 = vadd.f32 %v4125_v0, %v2172_v26  ;;  %v5029_v60 = vld [vmem:[#allocation48_spill] sm:$0xff]  ;;  %v5031_v26 = vld [vmem:[#allocation50_spill] sm:$0xff] }
 0x368   : > { %v2173_v45 = vadd.f32 %v5029_v60, %v2043_v28 }
 0x369   : > { %v2726_v8 = vadd.f32 %v4465_v20, %v2690_v2 }
 0x36a   : > { %v2363_v53 = vpop.f32.mrf.mxu3  ;;  %v2309_v0 = vadd.f32 %v4133_v24, %v2173_v45  ;;  %v5033_v24 = vld [vmem:[#allocation28_spill] sm:$0xff]  ;;  %v5035_v45 = vld [vmem:[#allocation29_spill] sm:$0xff] }
 0x36b   : > { %v2439_v10 = vadd.f32 %v2363_v53, %v2307_v11  ;;  %v2758_v46 = vmax.f32 %v2726_v8, 0.0  ;;  %v2174_v8 = vadd.f32 %v5031_v26, %v2044_v49  ;;  %v2045_v47 = vadd.f32 %v5033_v24, %v4250_v36 }
 0x36d   : > { %v2565_v62 = vadd.f32 %v4265_v4, %v2439_v10  ;;  %v4504_v4 = vpop.f32.mrf.mxu1  ;;  %v2310_v28 = vadd.f32 %v4149_v13, %v2174_v8  ;;  %v2046_v13 = vadd.f32 %v5035_v45, %v4259_v44  ;;  %v5037_v8 = vld [vmem:[#allocation34_spill] sm:$0xff]  ;;  %v5038_v44 = vld [vmem:[#allocation31_spill] sm:$0xff] }
 0x36f   : > { %v2691_v34 = vadd.f32 %v4390_v43, %v2565_v62  ;;  %3239 = vmatmul.msk.bf16.gmra.mxu3 %vm1338_vm4, %v5027_v25  ;;  %v4514_v53 = vpop.f32.mrf.mxu0  ;;  %v5032_v25 = vld [vmem:[#allocation30_spill] sm:$0xff] }
 0x371   : > { %v2727_v35 = vadd.f32 %v4465_v20, %v2691_v34 }
 0x372   : > { %v2366_v38 = vpop.f32.mrf.mxu3 }
 0x373   : > { %v2759_v3 = vmax.f32 %v2727_v35, 0.0  ;;  %v2440_v12 = vadd.f32 %v2366_v38, %v2308_v19 }
 0x375   : > { %v2789_v43 = vpack.c.bf16 %v2759_v3, %v2758_v46  ;;  %v2566_v17 = vadd.f32 %v4281_v40, %v2440_v12  ;;  %v4517_v62 = vpop.f32.mrf.mxu1  ;;  %v4521_v40 = vpop.f32.mrf.mxu2  ;;  %v5034_v12 = vld [vmem:[#allocation51_spill] sm:$0xff] }
 0x377   : > { %3278 = vmatmul.msk.bf16.gmra.mxu2 %vm1338_vm4, %v2789_v43  ;;  %v2692_v2 = vadd.f32 %v4401_v63, %v2566_v17  ;;  %v4531_v46 = vpop.f32.mrf.mxu0  ;;  %v2175_v43 = vadd.f32 %v5034_v12, %v2045_v47 }
 0x379   : > { %v2728_v34 = vadd.f32 %v4465_v20, %v2692_v2  ;;  %v2311_v17 = vadd.f32 %v4161_v50, %v2175_v43  ;;  %v5036_v2 = vld [vmem:[#allocation53_spill] sm:$0xff]  ;;  %v2047_v50 = vadd.f32 %v5038_v44, %v4268_v27 }
 0x37a   : > { %v2368_v11 = vpop.f32.mrf.mxu3  ;;  %v5040_v27 = vld [vmem:[#allocation33_spill] sm:$0xff] }
 0x37b   : > { %v2441_v10 = vadd.f32 %v2368_v11, %v2309_v0 }
 0x37d   : > { %v2567_v5 = vadd.f32 %v4288_v39, %v2441_v10  ;;  %v2760_v39 = vmax.f32 %v2728_v34, 0.0  ;;  %v4538_v36 = vpop.f32.mrf.mxu2  ;;  %v2176_v10 = vadd.f32 %v5036_v2, %v2046_v13 }
 0x37f   : > { %v2693_v16 = vadd.f32 %v4408_v48, %v2567_v5  ;;  %3240 = vmatmul.msk.bf16.gmra.mxu3 %vm1338_vm4, %v5032_v25  ;;  %v4534_v48 = vpop.f32.mrf.mxu1  ;;  %v4546_v5 = vpop.f32.mrf.mxu0 }
 0x381   : > { %v2729_v63 = vadd.f32 %v4465_v20, %v2693_v16 }
 0x382   : > { %v2371_v35 = vpop.f32.mrf.mxu3 }
 0x383   : > { %v2761_v19 = vmax.f32 %v2729_v63, 0.0  ;;  %v2442_v38 = vadd.f32 %v2371_v35, %v2310_v28 }
 0x385   : > { %v2790_v3 = vpack.c.bf16 %v2761_v19, %v2760_v39  ;;  %v2568_v60 = vadd.f32 %v4301_v21, %v2442_v38  ;;  %v4558_v16 = vpop.f32.mrf.mxu2  ;;  %v2048_v19 = vadd.f32 %v5040_v27, %v4277_v30  ;;  %v5043_v30 = vld [vmem:[#allocation35_spill] sm:$0xff] }
 0x387   : > { %3279 = vmatmul.msk.bf16.gmra.mxu2 %vm1338_vm4, %v2790_v3  ;;  %v2694_v49 = vadd.f32 %v4422_v29, %v2568_v60  ;;  %v4554_v34 = vpop.f32.mrf.mxu1  ;;  %v2514_v38 = vpop.f32.mrf.mxu0 }
 0x389   : > { %v2730_v21 = vadd.f32 %v4465_v20, %v2694_v49 }
 0x38a   : > { %v2373_v42 = vpop.f32.mrf.mxu3 }
 0x38b   : > { %v2443_v0 = vadd.f32 %v2373_v42, %v2311_v17  ;;  %v2762_v24 = vmax.f32 %v2730_v21, 0.0  ;;  %v5041_v17 = vld [vmem:[#allocation58_spill] sm:$0xff] }
 0x38c   : > { %v2178_v42 = vadd.f32 %v5041_v17, %v2048_v19 }
 0x38d   : > { %v2569_v11 = vadd.f32 %v4312_v14, %v2443_v0  ;;  %v2312_v14 = vadd.f32 %v4363_v37, %v2176_v10  ;;  %v4567_v45 = vpop.f32.mrf.mxu2  ;;  %v5042_v0 = vld [vmem:[#allocation36_spill] sm:$0xff] }
 0x38f   : > { %v2695_v26 = vadd.f32 %v4429_v41, %v2569_v11  ;;  %3241 = vmatmul.msk.bf16.gmra.mxu3 %vm1338_vm4, %v5037_v8  ;;  %v5039_v41 = vld [vmem:[#allocation55_spill] sm:$0xff]  ;;  %v2640_v12 = vpop.f32.mrf.mxu1  ;;  %v2517_v10 = vpop.f32.mrf.mxu0 }
 0x390   : > { %v2177_v35 = vadd.f32 %v5039_v41, %v2047_v50  ;;  %v5044_v50 = vld [vmem:[#allocation60_spill] sm:$0xff] }
 0x391   : > { %v2731_v29 = vadd.f32 %v4465_v20, %v2695_v26 }
 0x392   : > { %v2376_v25 = vpop.f32.mrf.mxu3  ;;  %v2313_v3 = vadd.f32 %v4374_v55, %v2177_v35  ;;  %v2049_v55 = vadd.f32 %v5043_v30, %v4286_v51  ;;  %v5045_v51 = vld [vmem:[#allocation23_spill] sm:$0xff]  ;;  %v5051_v30 = vld [vmem:[#allocation64_spill] sm:$0xff] }
 0x393   : > { %v2763_v47 = vmax.f32 %v2731_v29, 0.0  ;;  %v2444_v63 = vadd.f32 %v2376_v25, %v2312_v14  ;;  %v5046_v25 = vld [vmem:[#allocation37_spill] sm:$0xff] }
 0x395   : > { %v2791_v28 = vpack.c.bf16 %v2763_v47, %v2762_v24  ;;  %v2570_v39 = vadd.f32 %v4480_v32, %v2444_v63  ;;  %v4582_v29 = vpop.f32.mrf.mxu2  ;;  %v2050_v24 = vadd.f32 %v5046_v25, %v5045_v51 }
 0x397   : > { %3280 = vmatmul.msk.bf16.gmra.mxu2 %vm1338_vm4, %v2791_v28  ;;  %v2696_v43 = vadd.f32 %v4486_v15, %v2570_v39  ;;  %v2314_v15 = vadd.f32 %v4385_v18, %v2178_v42  ;;  %v4579_v8 = vpop.f32.mrf.mxu1  ;;  %v2519_v41 = vpop.f32.mrf.mxu0  ;;  %v5047_v39 = vld [vmem:[#allocation62_spill] sm:$0xff] }
 0x398   : > { %v2180_v27 = vadd.f32 %v5047_v39, %v2050_v24 }
 0x399   : > { %v2732_v32 = vadd.f32 %v4465_v20, %v2696_v43 }
 0x39a   : > { %v2378_v37 = vpop.f32.mrf.mxu3  ;;  %v2316_v17 = vadd.f32 %v4406_v61, %v2180_v27 }
 0x39b   : > { %v2445_v60 = vadd.f32 %v2378_v37, %v2313_v3  ;;  %v2764_v21 = vmax.f32 %v2732_v32, 0.0  ;;  %v5048_v37 = vld [vmem:[#allocation40_spill] sm:$0xff] }
 0x39d   : > { %v2571_v13 = vadd.f32 %v4500_v54, %v2445_v60  ;;  %v4596_v43 = vpop.f32.mrf.mxu2  ;;  %v5050_v60 = vld [vmem:[#allocation39_spill] sm:$0xff] }
 0x39f   : > { %v2697_v49 = vadd.f32 %v4504_v4, %v2571_v13  ;;  %3242 = vmatmul.msk.bf16.gmra.mxu3 %vm1338_vm4, %v5042_v0  ;;  %v2179_v4 = vadd.f32 %v5044_v50, %v2049_v55  ;;  %v2645_v19 = vpop.f32.mrf.mxu1  ;;  %v5054_v50 = vld [vmem:[#allocation38_spill] sm:$0xff] }
 0x3a1   : > { %v2733_v11 = vadd.f32 %v4465_v20, %v2697_v49  ;;  %v2315_v18 = vadd.f32 %v4392_v52, %v2179_v4  ;;  %v5049_v52 = vld [vmem:[#allocation25_spill] sm:$0xff]  ;;  %v2337_v4 = vsel %vm1213_vm5, %v5054_v50, 0.0 }
 0x3a2   : > { %v2381_v2 = vpop.f32.mrf.mxu3  ;;  %v2051_v13 = vadd.f32 %v5050_v60, %v5049_v52  ;;  %v2338_v24 = vpack.c.bf16 0.0, %v2337_v4 }
 0x3a3   : > { %v2765_v54 = vmax.f32 %v2733_v11, 0.0  ;;  %v2446_v26 = vadd.f32 %v2381_v2, %v2314_v15  ;;  %v5052_v15 = vld [vmem:[#allocation80_spill] sm:$0xff]  ;;  %v5053_v2 = vld [vmem:[#allocation41_spill] sm:$0xff] }
 0x3a4   : > { %v2181_v55 = vadd.f32 %v5051_v30, %v2051_v13  ;;  %v5057_v13 = vld [vmem:[#allocation68_spill] sm:$0xff] }
 0x3a5   : > { %v2792_v44 = vpack.c.bf16 %v2765_v54, %v2764_v21  ;;  %v2572_v14 = vadd.f32 %v4514_v53, %v2446_v26  ;;  %v2052_v21 = vadd.f32 %v5053_v2, %v5052_v15 }
 0x3a6   : > { %v2317_v26 = vadd.f32 %v4413_v56, %v2181_v55  ;;  %v5056_v56 = vld [vmem:[#allocation42_spill] sm:$0xff] }
 0x3a7   : > { %3281 = vmatmul.msk.bf16.gmra.mxu2 %vm1338_vm4, %v2792_v44  ;;  %v2698_v63 = vadd.f32 %v4517_v62, %v2572_v14  ;;  %v2648_v54 = vpop.f32.mrf.mxu1  ;;  %v4608_v44 = vpop.f32.mrf.mxu2  ;;  %v5059_v55 = vld [vmem:[#allocation70_spill] sm:$0xff] }
 0x3a9   : > { %v2734_v3 = vadd.f32 %v4465_v20, %v2698_v63 }
 0x3aa   : > { %v2383_v47 = vpop.f32.mrf.mxu3 }
 0x3ab   : > { %v2447_v28 = vadd.f32 %v2383_v47, %v2315_v18  ;;  %v2766_v42 = vmax.f32 %v2734_v3, 0.0 }
 0x3ad   : > { %v2573_v35 = vadd.f32 %v4531_v46, %v2447_v28  ;;  %v2053_v28 = vadd.f32 %v5056_v56, %v4321_v23  ;;  %v5058_v23 = vld [vmem:[#allocation43_spill] sm:$0xff] }
 0x3af   : > { %v2699_v53 = vadd.f32 %v4534_v48, %v2573_v35  ;;  %3243 = vmatmul.msk.bf16.gmra.mxu3 %vm1338_vm4, %v5048_v37  ;;  %v2522_v48 = vpop.f32.mrf.mxu0  ;;  %v4620_v52 = vpop.f32.mrf.mxu2 }
 0x3b1   : > { %v2735_v62 = vadd.f32 %v4465_v20, %v2699_v53 }
 0x3b2   : > { %v2386_v46 = vpop.f32.mrf.mxu3 }
 0x3b3   : > { %v2767_v32 = vmax.f32 %v2735_v62, 0.0  ;;  %v2448_v49 = vadd.f32 %v2386_v46, %v2316_v17  ;;  %v2054_v17 = vadd.f32 %v5058_v23, %v4330_v33 }
 0x3b5   : > { %v2793_v0 = vpack.c.bf16 %v2767_v32, %v2766_v42  ;;  %v2574_v11 = vadd.f32 %v4546_v5, %v2448_v49  ;;  %v5055_v5 = vld [vmem:[#allocation66_spill] sm:$0xff] }
 0x3b6   : > { %v2182_v18 = vadd.f32 %v5055_v5, %v2052_v21  ;;  %v5060_v21 = vld [vmem:[#allocation45_spill] sm:$0xff] }
 0x3b7   : > { %3282 = vmatmul.msk.bf16.gmra.mxu2 %vm1338_vm4, %v2793_v0  ;;  %v2700_v14 = vadd.f32 %v4554_v34, %v2574_v11  ;;  %v2524_v35 = vpop.f32.mrf.mxu0  ;;  %v2650_v34 = vpop.f32.mrf.mxu1  ;;  %v2184_v11 = vadd.f32 %v5059_v55, %v2054_v17  ;;  %v5069_v55 = vld [vmem:[#allocation52_spill] sm:$0xff] }
 0x3b8   : > { %v2318_v27 = vadd.f32 %v4424_v57, %v2182_v18  ;;  %v4629_v15 = vpop.f32.mrf.mxu2  ;;  %v5062_v18 = vld [vmem:[#allocation32_spill] sm:$0xff] }
 0x3b9   : > { %v2736_v47 = vadd.f32 %v4465_v20, %v2700_v14 }
 0x3ba   : > { %v2388_v61 = vpop.f32.mrf.mxu3 }
 0x3bb   : > { %v2449_v51 = vadd.f32 %v2388_v61, %v2317_v26  ;;  %v2768_v53 = vmax.f32 %v2736_v47, 0.0  ;;  %v2055_v26 = vadd.f32 %v5060_v21, %v4335_v7  ;;  %v5063_v7 = vld [vmem:[#allocation47_spill] sm:$0xff] }
 0x3bc   : > { %v2056_v47 = vadd.f32 %v5063_v7, %v5062_v18  ;;  %v5072_v18 = vld [vmem:[#allocation54_spill] sm:$0xff] }
 0x3bd   : > { %v2575_v25 = vadd.f32 %v2514_v38, %v2449_v51  ;;  %v5061_v51 = vld [vmem:[#allocation72_spill] sm:$0xff] }
 0x3bf   : > { %v2701_v63 = vadd.f32 %v2640_v12, %v2575_v25  ;;  %3244 = vmatmul.msk.bf16.gmra.mxu3 %vm1338_vm4, %v2338_v24  ;;  %v2183_v12 = vadd.f32 %v5057_v13, %v2053_v28  ;;  %v2527_v57 = vpop.f32.mrf.mxu0  ;;  %v2653_v0 = vpop.f32.mrf.mxu1  ;;  %v2185_v25 = vadd.f32 %v5061_v51, %v2055_v26 }
 0x3c1   : > { %v2737_v39 = vadd.f32 %v4465_v20, %v2701_v63  ;;  %v2319_v46 = vadd.f32 %v4434_v58, %v2183_v12  ;;  %v2320_v58 = vadd.f32 %v4446_v6, %v2184_v11  ;;  %v2321_v63 = vadd.f32 %v4455_v9, %v2185_v25 }
 0x3c2   : > { %v2391_v3 = vpop.f32.mrf.mxu3 }
 0x3c3   : > { %v2769_v38 = vmax.f32 %v2737_v39, 0.0  ;;  %v2450_v37 = vadd.f32 %v2391_v3, %v2318_v27  ;;  %v5064_v27 = vld [vmem:[#allocation74_spill] sm:$0xff] }
 0x3c4   : > { %v2186_v3 = vadd.f32 %v5064_v27, %v2056_v47 }
 0x3c5   : > { %v2794_v60 = vpack.c.bf16 %v2769_v38, %v2768_v53  ;;  %v2576_v62 = vadd.f32 %v2517_v10, %v2450_v37 }
 0x3c6   : > { %v2322_v23 = vadd.f32 %v4473_v31, %v2186_v3  ;;  %v5068_v31 = vld [vmem:[#allocation4_spill] sm:$0xff] }
 0x3c7   : > { %3283 = vmatmul.msk.bf16.gmra.mxu2 %vm1338_vm4, %v2794_v60  ;;  %v2702_v32 = vadd.f32 %v4579_v8, %v2576_v62  ;;  %v2529_v14 = vpop.f32.mrf.mxu0  ;;  %v2655_v24 = vpop.f32.mrf.mxu1  ;;  %v5066_v60 = vld [vmem:[#allocation49_spill] sm:$0xff]  ;;  %v2058_v11 = vadd.f32 %v5069_v55, %v5068_v31 }
 0x3c9   : > { %v2738_v10 = vadd.f32 %v4465_v20, %v2702_v32  ;;  %v5067_v32 = vld [vmem:[#allocation76_spill] sm:$0xff] }
 0x3ca   : > { %v2393_v42 = vpop.f32.mrf.mxu3 }
 0x3cb   : > { %v2451_v49 = vadd.f32 %v2393_v42, %v2319_v46  ;;  %v2770_v50 = vmax.f32 %v2738_v10, 0.0 }
 0x3cd   : > { %v2577_v30 = vadd.f32 %v2519_v41, %v2451_v49 }
 0x3cf   : > { %v2703_v2 = vadd.f32 %v2645_v19, %v2577_v30  ;;  %v4638_v19 = vpop.f32.mrf.mxu2  ;;  %v2532_v53 = vpop.f32.mrf.mxu0 }
 0x3d0   : > { %v2658_v12 = vpop.f32.mrf.mxu1 }
 0x3d1   : > { %v2739_v33 = vadd.f32 %v4465_v20, %v2703_v2 }
 0x3d2   : > { %v2396_v61 = vpop.f32.mrf.mxu3 }
 0x3d3   : > { %v2771_v8 = vmax.f32 %v2739_v33, 0.0  ;;  %v2452_v4 = vadd.f32 %v2396_v61, %v2320_v58 }
 0x3d5   : > { %v2795_v41 = vpack.c.bf16 %v2771_v8, %v2770_v50  ;;  %v2578_v5 = vadd.f32 %v2522_v48, %v2452_v4  ;;  %v5065_v48 = vld [vmem:[#allocation83_spill] sm:$0xff]  ;;  %v3314_v8 = vld [vmem:[%s3415_s8] sm:$0xff] }
 0x3d6   : > { %v2057_v13 = vadd.f32 %v5066_v60, %v5065_v48  ;;  %v5073_v60 = vld [vmem:[#allocation78_spill] sm:$0xff] }
 0x3d7   : > { %3284 = vmatmul.msk.bf16.gmra.mxu2 %vm1338_vm4, %v2795_v41  ;;  %v2704_v56 = vadd.f32 %v2648_v54, %v2578_v5  ;;  %v4649_v17 = vpop.f32.mrf.mxu2  ;;  %v2534_v10 = vpop.f32.mrf.mxu0  ;;  %v5070_v41 = vld [vmem:[#allocation77_spill] sm:$0xff] }
 0x3d8   : > { %v2187_v49 = vadd.f32 %v5067_v32, %v2057_v13  ;;  %v2660_v33 = vpop.f32.mrf.mxu1  ;;  %v2188_v51 = vadd.f32 %v5070_v41, %v2058_v11  ;;  %v5071_v5 = vld [vmem:[#allocation85_spill] sm:$0xff] }
 0x3d9   : > { %v2740_v38 = vadd.f32 %v4465_v20, %v2704_v56  ;;  %v2059_v7 = vadd.f32 %v5072_v18, %v5071_v5  ;;  %v3317_v5 = vld [vmem:[%s3415_s8 + $0x18] sm:$0xff] }
 0x3da   : > { %v2398_v6 = vpop.f32.mrf.mxu3  ;;  %v2323_v2 = vadd.f32 %v4489_v59, %v2187_v49  ;;  %v2324_v47 = vadd.f32 %v4506_v1, %v2188_v51  ;;  %v5074_v1 = vld [vmem:[#allocation5_spill] sm:$0xff] }
 0x3db   : > { %v2453_v28 = vadd.f32 %v2398_v6, %v2321_v63  ;;  %v2772_v54 = vmax.f32 %v2740_v38, 0.0  ;;  %v3315_v38 = vld [vmem:[%s3415_s8 + $0x8] sm:$0xff]  ;;  %v2189_v13 = vadd.f32 %v5073_v60, %v2059_v7  ;;  %v5079_v7 = vld [vmem:[#allocation17_spill] sm:$0xff] }
 0x3dd   : > { %v2579_v39 = vadd.f32 %v2524_v35, %v2453_v28 }
 0x3df   : > { %v2705_v37 = vadd.f32 %v2650_v34, %v2579_v39  ;;  %v4656_v34 = vld [vmem:[%s4872_s6] ss:$0 sm:$0xff]  ;;  %v2537_v56 = vpop.f32.mrf.mxu0 }
 0x3e1   : > { %v2741_v62 = vadd.f32 %v4465_v20, %v2705_v37 }
 0x3e2   : > { %v2401_v9 = vpop.f32.mrf.mxu3 }
 0x3e3   : > { %v2773_v46 = vmax.f32 %v2741_v62, 0.0  ;;  %v2454_v35 = vadd.f32 %v2401_v9, %v2322_v23  ;;  %v5075_v9 = vld [vmem:[#allocation56_spill] sm:$0xff] }
 0x3e5   : > { %v2796_v42 = vpack.c.bf16 %v2773_v46, %v2772_v54  ;;  %v2580_v30 = vadd.f32 %v2527_v57, %v2454_v35  ;;  %v2060_v54 = vadd.f32 %v5075_v9, %v5074_v1  ;;  %v2325_v46 = vadd.f32 %v4521_v40, %v2189_v13  ;;  %v5077_v40 = vld [vmem:[#allocation86_spill] sm:$0xff]  ;;  %v5082_v1 = vld [vmem:[#allocation19_spill] sm:$0xff] }
 0x3e7   : > { %3285 = vmatmul.msk.bf16.gmra.mxu2 %vm1338_vm4, %v2796_v42  ;;  %v2706_v58 = vadd.f32 %v2653_v0, %v2580_v30  ;;  %v2539_v31 = vpop.f32.mrf.mxu0 }
 0x3e9   : > { %v2742_v59 = vadd.f32 %v4465_v20, %v2706_v58 }
 0x3ea   : > { %v2403_v21 = vpop.f32.mrf.mxu3  ;;  %v2869_v26 = vpop.f32.mrf.mxu2 }
 0x3eb   : > { %v2455_v61 = vadd.f32 %v2403_v21, %v2323_v2  ;;  %v2870_v57 = vadd.f32 %v4656_v34, %v2869_v26  ;;  %v2774_v28 = vmax.f32 %v2742_v59, 0.0  ;;  %v5076_v2 = vld [vmem:[#allocation15_spill] sm:$0xff] }
 0x3ec   : > { %v2190_v21 = vadd.f32 %v5076_v2, %v2060_v54 }
 0x3ed   : > { %v2581_v50 = vadd.f32 %v2529_v14, %v2455_v61  ;;  %v2949_v4 = vadd.f32 %v3314_v8, %v2870_v57 }
 0x3ef   : > { %v2707_v25 = vadd.f32 %v2655_v24, %v2581_v50  ;;  %v2981_v0 = vmax.f32 %v2949_v4, 0.0  ;;  %v2663_v24 = vpop.f32.mrf.mxu1  ;;  %v5078_v50 = vld [vmem:[#allocation59_spill] sm:$0xff]  ;;  %v2326_v4 = vadd.f32 %v4538_v36, %v2190_v21  ;;  %v5080_v36 = vld [vmem:[#allocation6_spill] sm:$0xff] }
 0x3f0   : > { %v2061_v8 = vadd.f32 %v5078_v50, %v5077_v40  ;;  %v5085_v40 = vld [vmem:[#allocation21_spill] sm:$0xff] }
 0x3f1   : > { %v2743_v14 = vadd.f32 %v4465_v20, %v2707_v25  ;;  %3013 = vst.msk [vmem:[%s4669_s18] sm:$0xff] %vm340_vm0, %v2981_v0 }
 0x3f2   : > { %v2406_v63 = vpop.f32.mrf.mxu3  ;;  %v2871_v6 = vpop.f32.mrf.mxu2 }
 0x3f3   : > { %v2775_v39 = vmax.f32 %v2743_v14, 0.0  ;;  %v2456_v27 = vadd.f32 %v2406_v63, %v2324_v47  ;;  %v2872_v3 = vadd.f32 %v4656_v34, %v2871_v6  ;;  %v2191_v14 = vadd.f32 %v5079_v7, %v2061_v8  ;;  %v2542_v47 = vpop.f32.mrf.mxu0 }
 0x3f5   : > { %v2950_v37 = vadd.f32 %v3315_v38, %v2872_v3  ;;  %v2797_v48 = vpack.c.bf16 %v2775_v39, %v2774_v28  ;;  %v2582_v62 = vadd.f32 %v2532_v53, %v2456_v27  ;;  %v3316_v53 = vld [vmem:[%s3415_s8 + $0x10] sm:$0xff]  ;;  %v5081_v28 = vld [vmem:[#allocation61_spill] sm:$0xff]  ;;  %v2327_v3 = vadd.f32 %v4558_v16, %v2191_v14  ;;  %v5084_v16 = vld [vmem:[#allocation63_spill] sm:$0xff] }
 0x3f6   : > { %v2062_v39 = vadd.f32 %v5081_v28, %v5080_v36  ;;  %v3320_v14 = vld [vmem:[%s3415_s8 + $0x30] sm:$0xff] }
 0x3f7   : > { %v2982_v23 = vmax.f32 %v2950_v37, 0.0  ;;  %3286 = vmatmul.msk.bf16.gmra.mxu2 %vm1338_vm4, %v2797_v48  ;;  %v2708_v32 = vadd.f32 %v2658_v12, %v2582_v62  ;;  %v2665_v26 = vpop.f32.mrf.mxu1 }
 0x3f8   : > { %v2192_v9 = vadd.f32 %v5082_v1, %v2062_v39 }
 0x3f9   : > { %3014 = vst.msk [vmem:[%s4669_s18 + $0x8] sm:$0xff] %vm340_vm0, %v2982_v23  ;;  %v2744_v58 = vadd.f32 %v4465_v20, %v2708_v32  ;;  %v5083_v32 = vld [vmem:[#allocation87_spill] sm:$0xff] }
 0x3fa   : > { %v2408_v35 = vpop.f32.mrf.mxu3  ;;  %v2874_v42 = vpop.f32.mrf.mxu2 }
 0x3fb   : > { %v2457_v49 = vadd.f32 %v2408_v35, %v2325_v46  ;;  %v2875_v30 = vadd.f32 %v4656_v34, %v2874_v42  ;;  %v2776_v51 = vmax.f32 %v2744_v58, 0.0  ;;  %v2544_v42 = vpop.f32.mrf.mxu0  ;;  %v3319_v58 = vld [vmem:[%s3415_s8 + $0x28] sm:$0xff] }
 0x3fd   : > { %v2583_v55 = vadd.f32 %v2534_v10, %v2457_v49  ;;  %v2951_v11 = vadd.f32 %v3316_v53, %v2875_v30  ;;  %v2063_v49 = vadd.f32 %v5084_v16, %v5083_v32 }
 0x3ff   : > { %v2709_v61 = vadd.f32 %v2660_v33, %v2583_v55  ;;  %v2983_v57 = vmax.f32 %v2951_v11, 0.0  ;;  %v2668_v27 = vpop.f32.mrf.mxu1  ;;  %v2193_v50 = vadd.f32 %v5085_v40, %v2063_v49 }
 0x401   : > { %v2745_v12 = vadd.f32 %v4465_v20, %v2709_v61  ;;  %3015 = vst.msk [vmem:[%s4669_s18 + $0x10] sm:$0xff] %vm340_vm0, %v2983_v57 }
 0x402   : > { %v2411_v10 = vpop.f32.mrf.mxu3  ;;  %v2876_v41 = vpop.f32.mrf.mxu2 }
 0x403   : > { %v2777_v59 = vmax.f32 %v2745_v12, 0.0  ;;  %v2458_v25 = vadd.f32 %v2411_v10, %v2326_v4  ;;  %v2877_v0 = vadd.f32 %v4656_v34, %v2876_v41  ;;  %v5087_v4 = vld [vmem:[#allocation65_spill] sm:$0xff]  ;;  %v2329_v41 = vadd.f32 %v4582_v29, %v2193_v50  ;;  %v5089_v29 = vld [vmem:[#allocation88_spill] sm:$0xff] }
 0x405   : > { %v2952_v33 = vadd.f32 %v3317_v5, %v2877_v0  ;;  %v2798_v18 = vpack.c.bf16 %v2777_v59, %v2776_v51  ;;  %v2584_v63 = vadd.f32 %v2537_v56, %v2458_v25  ;;  %v3318_v56 = vld [vmem:[%s3415_s8 + $0x20] sm:$0xff]  ;;  %v2547_v25 = vpop.f32.mrf.mxu0 }
 0x407   : > { %v2984_v6 = vmax.f32 %v2952_v33, 0.0  ;;  %3287 = vmatmul.msk.bf16.gmra.mxu2 %vm1338_vm4, %v2798_v18  ;;  %v2710_v48 = vadd.f32 %v2663_v24, %v2584_v63  ;;  %v2328_v24 = vadd.f32 %v4567_v45, %v2192_v9  ;;  %v2670_v53 = vpop.f32.mrf.mxu1  ;;  %v5086_v45 = vld [vmem:[#allocation7_spill] sm:$0xff]  ;;  %v3321_v9 = vld [vmem:[%s3415_s8 + $0x38] sm:$0xff] }
 0x408   : > { %v2064_v10 = vadd.f32 %v5087_v4, %v5086_v45  ;;  %v5088_v63 = vld [vmem:[#allocation79_spill] sm:$0xff]  ;;  %v5095_v4 = vld [vmem:[#allocation89_spill] sm:$0xff] }
 0x409   : > { %3016 = vst.msk [vmem:[%s4669_s18 + $0x18] sm:$0xff] %vm340_vm0, %v2984_v6  ;;  %v2746_v54 = vadd.f32 %v4465_v20, %v2710_v48 }
 0x40a   : > { %v2413_v38 = vpop.f32.mrf.mxu3  ;;  %v2879_v37 = vpop.f32.mrf.mxu2  ;;  %v2194_v6 = vadd.f32 %v5088_v63, %v2064_v10 }
 0x40b   : > { %v2459_v60 = vadd.f32 %v2413_v38, %v2327_v3  ;;  %v2880_v13 = vadd.f32 %v4656_v34, %v2879_v37  ;;  %v2778_v11 = vmax.f32 %v2746_v54, 0.0  ;;  %v5090_v3 = vld [vmem:[#allocation67_spill] sm:$0xff] }
 0x40c   : > { %v2065_v38 = vadd.f32 %v5090_v3, %v5089_v29  ;;  %v5099_v3 = vld [vmem:[#allocation73_spill] sm:$0xff] }
 0x40d   : > { %v2585_v62 = vadd.f32 %v2539_v31, %v2459_v60  ;;  %v2953_v23 = vadd.f32 %v3318_v56, %v2880_v13  ;;  %v2549_v1 = vpop.f32.mrf.mxu0 }
 0x40f   : > { %v2711_v46 = vadd.f32 %v2665_v26, %v2585_v62  ;;  %v2985_v35 = vmax.f32 %v2953_v23, 0.0  ;;  %v2673_v18 = vpop.f32.mrf.mxu1 }
 0x411   : > { %v2747_v30 = vadd.f32 %v4465_v20, %v2711_v46  ;;  %3017 = vst.msk [vmem:[%s4669_s18 + $0x20] sm:$0xff] %vm340_vm0, %v2985_v35  ;;  %v5091_v35 = vld [vmem:[#allocation81_spill] sm:$0xff] }
 0x412   : > { %v2416_v31 = vpop.f32.mrf.mxu3  ;;  %v2881_v55 = vpop.f32.mrf.mxu2 }
 0x413   : > { %v2779_v2 = vmax.f32 %v2747_v30, 0.0  ;;  %v2460_v21 = vadd.f32 %v2416_v31, %v2328_v24  ;;  %v2882_v26 = vadd.f32 %v4656_v34, %v2881_v55  ;;  %v5093_v30 = vld [vmem:[#allocation69_spill] sm:$0xff] }
 0x415   : > { %v2954_v61 = vadd.f32 %v3319_v58, %v2882_v26  ;;  %v2799_v57 = vpack.c.bf16 %v2779_v2, %v2778_v11  ;;  %v2586_v8 = vadd.f32 %v2542_v47, %v2460_v21  ;;  %v3322_v58 = vld [vmem:[%s3415_s8 + $0x40] sm:$0xff]  ;;  %v2552_v50 = vpop.f32.mrf.mxu0 }
 0x417   : > { %v2986_v12 = vmax.f32 %v2954_v61, 0.0  ;;  %3288 = vmatmul.msk.bf16.gmra.mxu2 %vm1338_vm4, %v2799_v57  ;;  %v2712_v0 = vadd.f32 %v2668_v27, %v2586_v8  ;;  %v2330_v27 = vadd.f32 %v4596_v43, %v2194_v6  ;;  %v2675_v32 = vpop.f32.mrf.mxu1  ;;  %v5092_v43 = vld [vmem:[#allocation8_spill] sm:$0xff]  ;;  %v5094_v57 = vld [vmem:[#allocation2_spill] sm:$0xff] }
 0x418   : > { %v2066_v24 = vadd.f32 %v5093_v30, %v5092_v43  ;;  %v5097_v6 = vld [vmem:[#allocation82_spill] sm:$0xff] }
 0x419   : > { %3018 = vst.msk [vmem:[%s4669_s18 + $0x28] sm:$0xff] %vm340_vm0, %v2986_v12  ;;  %v2748_v36 = vadd.f32 %v4465_v20, %v2712_v0 }
 0x41a   : > { %v2418_v51 = vpop.f32.mrf.mxu3  ;;  %v2884_v59 = vpop.f32.mrf.mxu2  ;;  %v2196_v40 = vadd.f32 %v5094_v57, %v2066_v24 }
 0x41b   : > { %v2461_v5 = vadd.f32 %v2418_v51, %v2329_v41  ;;  %v2885_v33 = vadd.f32 %v4656_v34, %v2884_v59  ;;  %v2780_v13 = vmax.f32 %v2748_v36, 0.0 }
 0x41c   : > { %v2332_v59 = vadd.f32 %v4620_v52, %v2196_v40  ;;  %v5098_v52 = vld [vmem:[#allocation11_spill] sm:$0xff] }
 0x41d   : > { %v2587_v7 = vadd.f32 %v2544_v42, %v2461_v5  ;;  %v2955_v47 = vadd.f32 %v3320_v14, %v2885_v33  ;;  %v2195_v42 = vadd.f32 %v5091_v35, %v2065_v38  ;;  %v3323_v14 = vld [vmem:[%s3415_s8 + $0x48] sm:$0xff]  ;;  %v2554_v29 = vpop.f32.mrf.mxu0  ;;  %v2068_v38 = vadd.f32 %v5099_v3, %v5098_v52 }
 0x41f   : > { %v2713_v28 = vadd.f32 %v2670_v53, %v2587_v7  ;;  %v2987_v39 = vmax.f32 %v2955_v47, 0.0  ;;  %v2331_v31 = vadd.f32 %v4608_v44, %v2195_v42  ;;  %v5096_v44 = vld [vmem:[#allocation71_spill] sm:$0xff]  ;;  %v2678_v41 = vpop.f32.mrf.mxu1 }
 0x420   : > { %v2067_v10 = vadd.f32 %v5096_v44, %v5095_v4 }
 0x421   : > { %v2749_v37 = vadd.f32 %v4465_v20, %v2713_v28  ;;  %3019 = vst.msk [vmem:[%s4669_s18 + $0x30] sm:$0xff] %vm340_vm0, %v2987_v39 }
 0x422   : > { %v2421_v48 = vpop.f32.mrf.mxu3  ;;  %v2886_v60 = vpop.f32.mrf.mxu2  ;;  %v2197_v36 = vadd.f32 %v5097_v6, %v2067_v10 }
 0x423   : > { %v2781_v62 = vmax.f32 %v2749_v37, 0.0  ;;  %v2462_v56 = vadd.f32 %v2421_v48, %v2330_v27  ;;  %v2887_v23 = vadd.f32 %v4656_v34, %v2886_v60 }
 0x424   : > { %v2333_v37 = vadd.f32 %v4629_v15, %v2197_v36  ;;  %v5101_v15 = vld [vmem:[#allocation75_spill] sm:$0xff] }
 0x425   : > { %v2956_v54 = vadd.f32 %v3321_v9, %v2887_v23  ;;  %v2800_v46 = vpack.c.bf16 %v2781_v62, %v2780_v13  ;;  %v2588_v16 = vadd.f32 %v2547_v25, %v2462_v56  ;;  %v2557_v43 = vpop.f32.mrf.mxu0 }
 0x427   : > { %v2988_v49 = vmax.f32 %v2956_v54, 0.0  ;;  %3289 = vmatmul.msk.bf16.gmra.mxu2 %vm1338_vm4, %v2800_v46  ;;  %v2714_v11 = vadd.f32 %v2673_v18, %v2588_v16  ;;  %v2680_v56 = vpop.f32.mrf.mxu1  ;;  %v5100_v54 = vld [vmem:[#allocation3_spill] sm:$0xff]  ;;  %v2069_v16 = vadd.f32 %v5101_v15, %v4444_v22 }
 0x428   : > { %v2198_v46 = vadd.f32 %v5100_v54, %v2068_v38 }
 0x429   : > { %3020 = vst.msk [vmem:[%s4669_s18 + $0x38] sm:$0xff] %vm340_vm0, %v2988_v49  ;;  %v2750_v8 = vadd.f32 %v4465_v20, %v2714_v11 }
 0x42a   : > { %v2423_v55 = vpop.f32.mrf.mxu3  ;;  %v2889_v53 = vpop.f32.mrf.mxu2  ;;  %v2334_v30 = vadd.f32 %v4638_v19, %v2198_v46  ;;  %v3331_v46 = vld [vmem:[%s3415_s8 + $0x88] sm:$0xff] }
 0x42b   : > { %v2463_v2 = vadd.f32 %v2423_v55, %v2331_v31  ;;  %v2890_v21 = vadd.f32 %v4656_v34, %v2889_v53  ;;  %v2782_v5 = vmax.f32 %v2750_v8, 0.0 }
 0x42d   : > { %v2589_v26 = vadd.f32 %v2549_v1, %v2463_v2  ;;  %v2957_v61 = vadd.f32 %v3322_v58, %v2890_v21  ;;  %v3324_v1 = vld [vmem:[%s3415_s8 + $0x50] sm:$0xff]  ;;  %v2559_v10 = vpop.f32.mrf.mxu0 }
 0x42f   : > { %v2715_v12 = vadd.f32 %v2675_v32, %v2589_v26  ;;  %v2989_v45 = vmax.f32 %v2957_v61, 0.0  ;;  %v2683_v21 = vpop.f32.mrf.mxu1  ;;  %v3325_v26 = vld [vmem:[%s3415_s8 + $0x58] sm:$0xff]  ;;  %v5102_v61 = vld [vmem:[#allocation84_spill] sm:$0xff] }
 0x430   : > { %v2199_v57 = vadd.f32 %v5102_v61, %v2069_v16  ;;  %v3332_v16 = vld [vmem:[%s3415_s8 + $0x90] sm:$0xff] }
 0x431   : > { %v2751_v51 = vadd.f32 %v4465_v20, %v2715_v12  ;;  %3021 = vst.msk [vmem:[%s4669_s18 + $0x40] sm:$0xff] %vm340_vm0, %v2989_v45 }
 0x432   : > { %v2426_v25 = vpop.f32.mrf.mxu3  ;;  %v2891_v0 = vpop.f32.mrf.mxu2  ;;  %v2335_v19 = vadd.f32 %v4649_v17, %v2199_v57  ;;  %v3335_v57 = vld [vmem:[%s3415_s8 + $0xa8] sm:$0xff] }
 0x433   : > { %v2783_v33 = vmax.f32 %v2751_v51, 0.0  ;;  %v2464_v18 = vadd.f32 %v2426_v25, %v2332_v59  ;;  %v2892_v7 = vadd.f32 %v4656_v34, %v2891_v0  ;;  %v3326_v51 = vld [vmem:[%s3415_s8 + $0x60] sm:$0xff] }
 0x435   : > { %v2958_v47 = vadd.f32 %v3323_v14, %v2892_v7  ;;  %v2801_v63 = vpack.c.bf16 %v2783_v33, %v2782_v5  ;;  %v2590_v28 = vadd.f32 %v2552_v50, %v2464_v18 }
 0x437   : > { %v2990_v39 = vmax.f32 %v2958_v47, 0.0  ;;  %3290 = vmatmul.msk.bf16.gmra.mxu2 %vm1338_vm4, %v2801_v63  ;;  %v2716_v60 = vadd.f32 %v2678_v41, %v2590_v28  ;;  %v2685_v25 = vpop.f32.mrf.mxu1  ;;  %v3327_v63 = vld [vmem:[%s3415_s8 + $0x68] sm:$0xff] }
 0x439   : > { %3022 = vst.msk [vmem:[%s4669_s18 + $0x48] sm:$0xff] %vm340_vm0, %v2990_v39  ;;  %v2752_v35 = vadd.f32 %v4465_v20, %v2716_v60 }
 0x43a   : > { %v2428_v27 = vpop.f32.mrf.mxu3  ;;  %v2894_v48 = vpop.f32.mrf.mxu2 }
 0x43b   : > { %v2465_v13 = vadd.f32 %v2428_v27, %v2333_v37  ;;  %v2895_v62 = vadd.f32 %v4656_v34, %v2894_v48  ;;  %v2784_v55 = vmax.f32 %v2752_v35, 0.0  ;;  %v3329_v27 = vld [vmem:[%s3415_s8 + $0x78] sm:$0xff] }
 0x43d   : > { %v2591_v23 = vadd.f32 %v2554_v29, %v2465_v13  ;;  %v2959_v9 = vadd.f32 %v3324_v1, %v2895_v62  ;;  %v3328_v29 = vld [vmem:[%s3415_s8 + $0x70] sm:$0xff] }
 0x43f   : > { %v2717_v42 = vadd.f32 %v2680_v56, %v2591_v23  ;;  %v2991_v32 = vmax.f32 %v2959_v9, 0.0  ;;  %v3330_v56 = vld [vmem:[%s3415_s8 + $0x80] sm:$0xff] }
 0x441   : > { %v2753_v49 = vadd.f32 %v4465_v20, %v2717_v42  ;;  %3023 = vst.msk [vmem:[%s4669_s18 + $0x50] sm:$0xff] %vm340_vm0, %v2991_v32 }
 0x442   : > { %v2431_v24 = vpop.f32.mrf.mxu3  ;;  %v2896_v31 = vpop.f32.mrf.mxu2 }
 0x443   : > { %v2785_v53 = vmax.f32 %v2753_v49, 0.0  ;;  %v2466_v11 = vadd.f32 %v2431_v24, %v2334_v30  ;;  %v2897_v2 = vadd.f32 %v4656_v34, %v2896_v31  ;;  %v3333_v31 = vld [vmem:[%s3415_s8 + $0x98] sm:$0xff] }
 0x445   : > { %v2960_v58 = vadd.f32 %v3325_v26, %v2897_v2  ;;  %v2802_v22 = vpack.c.bf16 %v2785_v53, %v2784_v55  ;;  %v2592_v40 = vadd.f32 %v2557_v43, %v2466_v11 }
 0x447   : > { %v2992_v50 = vmax.f32 %v2960_v58, 0.0  ;;  %3291 = vmatmul.msk.bf16.gmra.mxu2 %vm1338_vm4, %v2802_v22  ;;  %v2718_v45 = vadd.f32 %v2683_v21, %v2592_v40  ;;  %v3334_v21 = vld [vmem:[%s3415_s8 + $0xa0] sm:$0xff] }
 0x449   : > { %3024 = vst.msk [vmem:[%s4669_s18 + $0x58] sm:$0xff] %vm340_vm0, %v2992_v50  ;;  %v2754_v0 = vadd.f32 %v4465_v20, %v2718_v45 }
 0x44a   : > { %v2433_v8 = vpop.f32.mrf.mxu3  ;;  %v2899_v12 = vpop.f32.mrf.mxu2 }
 0x44b   : > { %v2467_v4 = vadd.f32 %v2433_v8, %v2335_v19  ;;  %v2900_v44 = vadd.f32 %v4656_v34, %v2899_v12  ;;  %v2786_v7 = vmax.f32 %v2754_v0, 0.0  ;;  %v3336_v12 = vld [vmem:[%s3415_s8 + $0xb0] sm:$0xff] }
 0x44d   : > { %v2593_v41 = vadd.f32 %v2559_v10, %v2467_v4  ;;  %v2961_v59 = vadd.f32 %v3326_v51, %v2900_v44 }
 0x44f   : > { %v2719_v5 = vadd.f32 %v2685_v25, %v2593_v41  ;;  %v2993_v33 = vmax.f32 %v2961_v59, 0.0  ;;  %v3337_v41 = vld [vmem:[%s3415_s8 + $0xb8] sm:$0xff] }
 0x451   : > { %v2755_v17 = vadd.f32 %v4465_v20, %v2719_v5  ;;  %3025 = vst.msk [vmem:[%s4669_s18 + $0x60] sm:$0xff] %vm340_vm0, %v2993_v33  ;;  %v3338_v5 = vld [vmem:[%s3415_s8 + $0xc0] sm:$0xff] }
 0x452   : > { %v2901_v18 = vpop.f32.mrf.mxu2 }
 0x453   : > { %v2787_v14 = vmax.f32 %v2755_v17, 0.0  ;;  %v2902_v47 = vadd.f32 %v4656_v34, %v2901_v18 }
 0x455   : > { %v2962_v6 = vadd.f32 %v3327_v63, %v2902_v47  ;;  %v2803_v36 = vpack.c.bf16 %v2787_v14, %v2786_v7  ;;  %v3339_v14 = vld [vmem:[%s3415_s8 + $0xc8] sm:$0xff] }
 0x457   : > { %v2994_v28 = vmax.f32 %v2962_v6, 0.0  ;;  %3292 = vmatmul.msk.bf16.gmra.mxu2 %vm1338_vm4, %v2803_v36 }
 0x459   : > { %3026 = vst.msk [vmem:[%s4669_s18 + $0x68] sm:$0xff] %vm340_vm0, %v2994_v28  ;;  %v3340_v28 = vld [vmem:[%s3415_s8 + $0xd0] sm:$0xff] }
 0x45a   : > { %v2904_v20 = vpop.f32.mrf.mxu2 }
 0x45b   : > { %v2905_v39 = vadd.f32 %v4656_v34, %v2904_v20 }
 0x45d   : > { %v2963_v52 = vadd.f32 %v3328_v29, %v2905_v39 }
 0x45f   : > { %v2995_v3 = vmax.f32 %v2963_v52, 0.0 }
 0x461   : > { %3027 = vst.msk [vmem:[%s4669_s18 + $0x70] sm:$0xff] %vm340_vm0, %v2995_v3  ;;  %v3341_v3 = vld [vmem:[%s3415_s8 + $0xd8] sm:$0xff] }
 0x462   : > { %v2906_v38 = vpop.f32.mrf.mxu2 }
 0x463   : > { %v2907_v37 = vadd.f32 %v4656_v34, %v2906_v38 }
 0x465   : > { %v2964_v48 = vadd.f32 %v3329_v27, %v2907_v37 }
 0x467   : > { %v2996_v60 = vmax.f32 %v2964_v48, 0.0 }
 0x469   : > { %3028 = vst.msk [vmem:[%s4669_s18 + $0x78] sm:$0xff] %vm340_vm0, %v2996_v60  ;;  %v3342_v60 = vld [vmem:[%s3415_s8 + $0xe0] sm:$0xff] }
 0x46a   : > { %v2909_v13 = vpop.f32.mrf.mxu2 }
 0x46b   : > { %v2910_v62 = vadd.f32 %v4656_v34, %v2909_v13 }
 0x46d   : > { %v2965_v23 = vadd.f32 %v3330_v56, %v2910_v62 }
 0x46f   : > { %v2997_v1 = vmax.f32 %v2965_v23, 0.0 }
 0x471   : > { %3029 = vst.msk [vmem:[%s4669_s18 + $0x80] sm:$0xff] %vm340_vm0, %v2997_v1  ;;  %v3343_v1 = vld [vmem:[%s3415_s8 + $0xe8] sm:$0xff] }
 0x472   : > { %v2911_v9 = vpop.f32.mrf.mxu2 }
 0x473   : > { %v2912_v54 = vadd.f32 %v4656_v34, %v2911_v9 }
 0x475   : > { %v2966_v35 = vadd.f32 %v3331_v46, %v2912_v54 }
 0x477   : > { %v2998_v42 = vmax.f32 %v2966_v35, 0.0 }
 0x479   : > { %3030 = vst.msk [vmem:[%s4669_s18 + $0x88] sm:$0xff] %vm340_vm0, %v2998_v42  ;;  %v3344_v42 = vld [vmem:[%s3415_s8 + $0xf0] sm:$0xff] }
 0x47a   : > { %v2914_v32 = vpop.f32.mrf.mxu2 }
 0x47b   : > { %v2915_v15 = vadd.f32 %v4656_v34, %v2914_v32 }
 0x47d   : > { %v2967_v49 = vadd.f32 %v3332_v16, %v2915_v15 }
 0x47f   : > { %v2999_v43 = vmax.f32 %v2967_v49, 0.0 }
 0x481   : > { %3031 = vst.msk [vmem:[%s4669_s18 + $0x90] sm:$0xff] %vm340_vm0, %v2999_v43  ;;  %v3345_v43 = vld [vmem:[%s3415_s8 + $0xf8] sm:$0xff] }
 0x482   : > { %v2916_v30 = vpop.f32.mrf.mxu2 }
 0x483   : > { %v2917_v24 = vadd.f32 %v4656_v34, %v2916_v30 }
 0x485   : > { %v2968_v55 = vadd.f32 %v3333_v31, %v2917_v24 }
 0x487   : > { %v3000_v53 = vmax.f32 %v2968_v55, 0.0 }
 0x489   : > { %3032 = vst.msk [vmem:[%s4669_s18 + $0x98] sm:$0xff] %vm340_vm0, %v3000_v53 }
 0x48a   : > { %v2919_v11 = vpop.f32.mrf.mxu2 }
 0x48b   : > { %v2920_v2 = vadd.f32 %v4656_v34, %v2919_v11 }
 0x48d   : > { %v2969_v26 = vadd.f32 %v3334_v21, %v2920_v2 }
 0x48f   : > { %v3001_v58 = vmax.f32 %v2969_v26, 0.0 }
 0x491   : > { %3033 = vst.msk [vmem:[%s4669_s18 + $0xa0] sm:$0xff] %vm340_vm0, %v3001_v58 }
 0x492   : > { %v2921_v22 = vpop.f32.mrf.mxu2 }
 0x493   : > { %v2922_v61 = vadd.f32 %v4656_v34, %v2921_v22 }
 0x495   : > { %v2970_v40 = vadd.f32 %v3335_v57, %v2922_v61 }
 0x497   : > { %v3002_v50 = vmax.f32 %v2970_v40, 0.0 }
 0x499   : > { %3034 = vst.msk [vmem:[%s4669_s18 + $0xa8] sm:$0xff] %vm340_vm0, %v3002_v50 }
 0x49a   : > { %v2924_v19 = vpop.f32.mrf.mxu2 }
 0x49b   : > { %v2925_v8 = vadd.f32 %v4656_v34, %v2924_v19 }
 0x49d   : > { %v2971_v45 = vadd.f32 %v3336_v12, %v2925_v8 }
 0x49f   : > { %v3003_v4 = vmax.f32 %v2971_v45, 0.0 }
 0x4a1   : > { %3035 = vst.msk [vmem:[%s4669_s18 + $0xb0] sm:$0xff] %vm340_vm0, %v3003_v4 }
 0x4a2   : > { %v2926_v44 = vpop.f32.mrf.mxu2 }
 0x4a3   : > { %v2927_v10 = vadd.f32 %v4656_v34, %v2926_v44 }
 0x4a5   : > { %v2972_v51 = vadd.f32 %v3337_v41, %v2927_v10 }
 0x4a7   : > { %v3004_v59 = vmax.f32 %v2972_v51, 0.0 }
 0x4a9   : > { %3036 = vst.msk [vmem:[%s4669_s18 + $0xb8] sm:$0xff] %vm340_vm0, %v3004_v59 }
 0x4aa   : > { %v2929_v25 = vpop.f32.mrf.mxu2 }
 0x4ab   : > { %v2930_v0 = vadd.f32 %v4656_v34, %v2929_v25 }
 0x4ad   : > { %v2973_v33 = vadd.f32 %v3338_v5, %v2930_v0 }
 0x4af   : > { %v3005_v17 = vmax.f32 %v2973_v33, 0.0 }
 0x4b1   : > { %3037 = vst.msk [vmem:[%s4669_s18 + $0xc0] sm:$0xff] %vm340_vm0, %v3005_v17 }
 0x4b2   : > { %v2931_v18 = vpop.f32.mrf.mxu2 }
 0x4b3   : > { %v2932_v7 = vadd.f32 %v4656_v34, %v2931_v18 }
 0x4b5   : > { %v2974_v47 = vadd.f32 %v3339_v14, %v2932_v7 }
 0x4b7   : > { %v3006_v63 = vmax.f32 %v2974_v47, 0.0 }
 0x4b9   : > { %3038 = vst.msk [vmem:[%s4669_s18 + $0xc8] sm:$0xff] %vm340_vm0, %v3006_v63 }
 0x4ba   : > { %v2934_v6 = vpop.f32.mrf.mxu2 }
 0x4bb   : > { %v2935_v36 = vadd.f32 %v4656_v34, %v2934_v6 }
 0x4bd   : > { %v2975_v20 = vadd.f32 %v3340_v28, %v2935_v36 }
 0x4bf   : > { %v3007_v39 = vmax.f32 %v2975_v20, 0.0 }
 0x4c1   : > { %3039 = vst.msk [vmem:[%s4669_s18 + $0xd0] sm:$0xff] %vm340_vm0, %v3007_v39 }
 0x4c2   : > { %v2936_v29 = vpop.f32.mrf.mxu2 }
 0x4c3   : > { %v2937_v52 = vadd.f32 %v4656_v34, %v2936_v29 }
 0x4c5   : > { %v2976_v38 = vadd.f32 %v3341_v3, %v2937_v52 }
 0x4c7   : > { %v3008_v37 = vmax.f32 %v2976_v38, 0.0 }
 0x4c9   : > { %3040 = vst.msk [vmem:[%s4669_s18 + $0xd8] sm:$0xff] %vm340_vm0, %v3008_v37 }
 0x4ca   : > { %v2939_v27 = vpop.f32.mrf.mxu2 }
 0x4cb   : > { %v2940_v48 = vadd.f32 %v4656_v34, %v2939_v27 }
 0x4cd   : > { %v2977_v13 = vadd.f32 %v3342_v60, %v2940_v48 }
 0x4cf   : > { %v3009_v62 = vmax.f32 %v2977_v13, 0.0 }
 0x4d1   : > { %3041 = vst.msk [vmem:[%s4669_s18 + $0xe0] sm:$0xff] %vm340_vm0, %v3009_v62 }
 0x4d2   : > { %v2941_v56 = vpop.f32.mrf.mxu2 }
 0x4d3   : > { %v2942_v23 = vadd.f32 %v4656_v34, %v2941_v56 }
 0x4d5   : > { %v2978_v9 = vadd.f32 %v3343_v1, %v2942_v23 }
 0x4d7   : > { %v3010_v54 = vmax.f32 %v2978_v9, 0.0 }
 0x4d9   : > { %3042 = vst.msk [vmem:[%s4669_s18 + $0xe8] sm:$0xff] %vm340_vm0, %v3010_v54 }
 0x4da   : > { %v2944_v46 = vpop.f32.mrf.mxu2 }
 0x4db   : > { %v2945_v35 = vadd.f32 %v4656_v34, %v2944_v46 }
 0x4dd   : > { %v2979_v32 = vadd.f32 %v3344_v42, %v2945_v35 }
 0x4df   : > { %v3011_v15 = vmax.f32 %v2979_v32, 0.0 }
 0x4e1   : > { %3043 = vst.msk [vmem:[%s4669_s18 + $0xf0] sm:$0xff] %vm340_vm0, %v3011_v15 }
 0x4e2   : > { %v2946_v16 = vpop.f32.mrf.mxu2 }
 0x4e3   : > { %v2947_v49 = vadd.f32 %v4656_v34, %v2946_v16 }
 0x4e5   : > { %v2980_v30 = vadd.f32 %v3345_v43, %v2947_v49 }
 0x4e7   : > { %v3012_v24 = vmax.f32 %v2980_v30, 0.0 }
 0x4e9   : > { %3044 = vst.msk [vmem:[%s4669_s18 + $0xf8] sm:$0xff] %vm340_vm0, %v3012_v24 }
 0x4ea PF: > { %s17_s24 = sadd.s32 1, %s3352_s24  }
 0x4eb   : > { %p14_p4 = scmp.ge.s32.totalorder %s17_s24, 4  }
 0x4ed   :  { %16 = sbr.rel (!%p14_p4) target bundleno = 1 (0x1), region = 86 }

</bundles_post_ra>
